<compile_context>
chip_gen: v6e
topology: v6e:2x2x1
jax: 0.10.0
libtpu: 0.0.40
codegen_flags: <defaults>
</compile_context>

<pallas_src>
import jax
import jax.numpy as jnp
from jax import lax
from jax.experimental import pallas as pl
from jax.experimental.pallas import tpu as pltpu

# --- RewardModel configuration (baked as Python constants, as in __init__) ---
PAD_ID = 0
NUM_PADDING_AT_BEGINNING = 0
COMPUTE_FP32_LOSS = False


# ----------------------- generation-aware VMEM planning -----------------------
def _vmem_plan():
    """(scoped_vmem_limit_bytes, per-block byte budget) for the current TPU.

    v5e/v6e: 128 MiB physical -> 64 MiB scoped limit, 16 MiB per input block.
    v7x:      64 MiB physical -> 32 MiB scoped limit,  8 MiB per input block.
    Two pipeline buffers of the input block then use ~50% of the scoped limit,
    leaving headroom for the resident weight, the output block and internal scratch.
    """
    try:
        cap = int(pltpu.get_tpu_info().vmem_capacity_bytes)
    except Exception:
        cap = 128 << 20
    scoped_limit = min(cap // 2, 64 << 20)
    block_budget = scoped_limit // 4
    return scoped_limit, block_budget


def _pick_tile_rows(n_rows, H, itemsize, block_budget_bytes):
    """Largest multiple-of-128 row count whose (TILE_R, H) block fits the budget.

    No divisor requirement: the grid uses pl.cdiv and Pallas masks the ragged last
    block (partial out-of-bounds reads only feed discarded out-of-bounds outputs).
    128 keeps the input sublane dim a multiple of 8 and the output store lane-dense.
    """
    bytes_per_row = max(H * itemsize, 1)
    t = (block_budget_bytes // bytes_per_row) // 128 * 128
    t = max(t, 128)
    n_rows_up = pl.cdiv(n_rows, 128) * 128   # never tile past the problem size
    return min(t, n_rows_up)


# -------------------------- Kernel 1: v_head projection ----------------------
def v_head_kernel(h_ref, w_ref, o_ref):
    h = h_ref[...]                                   # (TILE_R, H), native dtype
    w = w_ref[...]                                   # (H, 1), pre-cast, resident
    # Natural MXU feed [M,K] @ [K,N]: no transpose of the big hidden block.
    r = jnp.dot(h, w, preferred_element_type=jnp.float32)   # (TILE_R, 1) f32
    # Only the small result is transposed, keeping the store lane-dense.
    o_ref[...] = r.T.astype(o_ref.dtype)             # (1, TILE_R)


def v_head_rewards(hidden_states, v_head_w):
    """rewards = self.v_head(hidden_states).squeeze(-1)  ->  (B, S) float32."""
    B, S, H = hidden_states.shape
    itemsize = jnp.dtype(hidden_states.dtype).itemsize
    N = B * S

    scoped_limit, block_budget = _vmem_plan()
    tile_r = _pick_tile_rows(N, H, itemsize, block_budget)
    grid = (pl.cdiv(N, tile_r),)

    h2d = hidden_states.reshape(N, H)                # free (contiguous) reshape
    # Hoisted cast + transpose: weight enters the kernel already in matmul dtype and
    # in [K, N] layout.  (bf16 hidden_states => bf16 v_head matmul, as a bf16 Linear.)
    w_col = v_head_w.reshape(H, 1).astype(hidden_states.dtype)

    rewards = pl.pallas_call(
        v_head_kernel,
        out_shape=jax.ShapeDtypeStruct((1, N), jnp.float32),
        grid=grid,
        in_specs=[
            pl.BlockSpec((tile_r, H), lambda r: (r, 0)),   # hidden row tile
            pl.BlockSpec((H, 1), lambda r: (0, 0)),        # weight (resident)
        ],
        out_specs=pl.BlockSpec((1, tile_r), lambda r: (0, r)),
        compiler_params=pltpu.CompilerParams(
            dimension_semantics=("parallel",),
            vmem_limit_bytes=scoped_limit),
        cost_estimate=pl.CostEstimate(
            flops=2 * N * H,
            transcendentals=0,
            bytes_accessed=N * H * itemsize + H * itemsize + N * 4),
    )(h2d, w_col)
    return rewards.reshape(B, S)


# ---------------------- Kernel 2: pairwise reward loss -----------------------
def _kth_pad_index(pad_mask, pos, seq_len, k):
    """Index of the (k+1)-th True in pad_mask along axis=1, or seq_len if absent.
    k is a static Python int (num_padding_at_beginning), so the loop unrolls."""
    m = pad_mask
    for _ in range(k):
        first = jnp.min(jnp.where(m, pos, seq_len), axis=1, keepdims=True)
        m = jnp.logical_and(m, pos > first)
    return jnp.min(jnp.where(m, pos, seq_len), axis=1, keepdims=True)


def pairwise_loss_kernel(ids_ref, rew_ref, loss_ref, cms_ref, rms_ref):
    seq_len = ids_ref.shape[-1]
    cid = ids_ref[0]          # (bs, S) int32  chosen ids
    rid = ids_ref[1]          # (bs, S) int32  rejected ids
    crew = rew_ref[0]         # (bs, S) f32    chosen rewards
    rrew = rew_ref[1]         # (bs, S) f32    rejected rewards

    pos = lax.broadcasted_iota(jnp.int32, cid.shape, 1)

    # c_ind / r_ind: position of the num_padding_at_beginning-th PAD token
    # (else seq_len), exactly as c_inds[k].item() / seq_len in the torch code.
    c_pad = cid == PAD_ID
    r_pad = rid == PAD_ID
    c_ind = _kth_pad_index(c_pad, pos, seq_len, NUM_PADDING_AT_BEGINNING)      # (bs,1)
    r_ind_pad = _kth_pad_index(r_pad, pos, seq_len, NUM_PADDING_AT_BEGINNING)  # (bs,1)

    # divergence index: first position where chosen != rejected
    diff = cid != rid
    has_div = jnp.sum(diff.astype(jnp.int32), axis=1, keepdims=True) > 0       # (bs,1)
    first_div = jnp.min(jnp.where(diff, pos, seq_len), axis=1, keepdims=True)  # (bs,1)

    divergence_ind = jnp.where(has_div, first_div, seq_len - 1)
    end_ind = jnp.where(has_div, jnp.maximum(c_ind, r_ind_pad), seq_len)
    r_ind = jnp.where(has_div, r_ind_pad, c_ind)

    # -logsigmoid(c - r).mean() over [divergence_ind, end_ind)
    mask = jnp.logical_and(pos >= divergence_ind, pos < end_ind)
    delta = crew - rrew
    if COMPUTE_FP32_LOSS:
        # rewards are already f32 in this path; keep the hook for bf16 v_heads.
        delta = delta.astype(jnp.float32)
    # -log_sigmoid(x) = softplus(-x): single-exp numerically-stable form
    # (halves EUP work vs the two-branch split).
    neg_logsig = jnp.maximum(-delta, 0.0) + jnp.log1p(jnp.exp(-jnp.abs(delta)))
    maskf = mask.astype(delta.dtype)
    cnt = jnp.sum(maskf, axis=1, keepdims=True)                                # (bs,1)
    # cnt == 0 (divergence only inside the padded region) yields NaN, matching the
    # torch reference (mean of an empty slice).  Surface it under debug checks.
    if pl.debug_checks_enabled():
        pl.debug_check(jnp.all(cnt > 0),
                       "empty truncated-reward slice -> NaN pair loss")
    per_pair_loss = jnp.sum(neg_logsig * maskf, axis=1, keepdims=True) / cnt   # (bs,1)
    loss_ref[...] = jnp.mean(per_pair_loss, axis=0, keepdims=True)             # (1,1)

    # end scores: chosen_reward[c_ind - 1], rejected_reward[r_ind - 1];
    # index 0 wraps to the last position like torch's negative indexing.
    c_g = jnp.where(c_ind > 0, c_ind - 1, seq_len - 1)
    r_g = jnp.where(r_ind > 0, r_ind - 1, seq_len - 1)
    cms_ref[...] = jnp.sum(crew * (pos == c_g).astype(crew.dtype),
                           axis=1, keepdims=True)
    rms_ref[...] = jnp.sum(rrew * (pos == r_g).astype(rrew.dtype),
                           axis=1, keepdims=True)


# --------------------------------- Wrapper -----------------------------------
def reward_model_forward(input_ids, hidden_states, v_head_w):
    """Equivalent of RewardModel.forward (loss / chosen / rejected mean scores)."""
    B, S, H = hidden_states.shape
    assert input_ids.shape == (B, S) and B % 2 == 0
    bs = B // 2

    rewards = v_head_rewards(hidden_states, v_head_w)          # (B, S) f32

    # Free (contiguous) reshapes: chosen = row 0, rejected = row 1 of the leading axis.
    # Each array is passed ONCE; the kernel indexes ref[0] / ref[1] (no duplicated
    # HBM reads, half the previous input count).
    ids3 = input_ids.astype(jnp.int32).reshape(2, bs, S)
    rew3 = rewards.reshape(2, bs, S)

    loss, cms, rms = pl.pallas_call(
        pairwise_loss_kernel,
        out_shape=(jax.ShapeDtypeStruct((1, 1), jnp.float32),
                   jax.ShapeDtypeStruct((bs, 1), jnp.float32),
                   jax.ShapeDtypeStruct((bs, 1), jnp.float32)),
        grid=(1,),
        in_specs=[
            pl.BlockSpec((2, bs, S), lambda i: (0, 0, 0)),   # chosen+rejected ids
            pl.BlockSpec((2, bs, S), lambda i: (0, 0, 0)),   # chosen+rejected rewards
        ],
        out_specs=(pl.BlockSpec((1, 1), lambda i: (0, 0)),
                   pl.BlockSpec((bs, 1), lambda i: (0, 0)),
                   pl.BlockSpec((bs, 1), lambda i: (0, 0))),
        compiler_params=pltpu.CompilerParams(
            dimension_semantics=("arbitrary",)),
    )(ids3, rew3)

    return {
        "loss": loss[0, 0],
        "chosen_mean_scores": cms[:, 0],
        "rejected_mean_scores": rms[:, 0],
    }


# ----------------------------------- Main ------------------------------------
if __name__ == "__main__":
    bs, S, H, V = 2, 384, 128, 17        # batch-of-pairs, seq (3x128), hidden, vocab
    key = jax.random.PRNGKey(0)
    k_c, k_r, k_e, k_w = jax.random.split(key, 4)

    # Deterministic chosen / rejected sequences with PAD tails and a shared prefix
    chosen = jax.random.randint(k_c, (bs, S), 1, V, dtype=jnp.int32)
    rejected = jax.random.randint(k_r, (bs, S), 1, V, dtype=jnp.int32)
    rejected = rejected.at[:, :64].set(chosen[:, :64])   # shared prompt -> divergence_ind > 0
    chosen = chosen.at[:, 300:].set(PAD_ID)              # chosen padded from position 300
    rejected = rejected.at[:, 340:].set(PAD_ID)          # rejected padded from position 340
    input_ids = jnp.concatenate([chosen, rejected], axis=0)   # (2*bs, S)

    # Synthetic base-model hidden states (stand-in for rwtransformer output)
    embed_table = jax.random.normal(k_e, (V, H), dtype=jnp.float32) * 0.1
    hidden_states = embed_table[input_ids]                     # (2*bs, S, H)

    # v_head weight, deterministic
    v_head_w = jax.random.normal(k_w, (H,), dtype=jnp.float32) * 0.05

    out = reward_model_forward(input_ids, hidden_states, v_head_w)
    jax.block_until_ready(out)
    assert out["chosen_mean_scores"].shape == (bs,)
    assert out["rejected_mean_scores"].shape == (bs,)
    assert out["loss"].shape == ()
    assert bool(jnp.isfinite(out["loss"]))
    print("KERNEL_OK")
</pallas_src>

<mosaic_0001>
module attributes {stable_mosaic.version = 11 : i64} {
  func.func @v_head_kernel(%arg0: i32, %arg1: memref<1536x128xf32, #tpu.memory_space<vmem>>, %arg2: memref<128x1xf32, #tpu.memory_space<vmem>>, %arg3: memref<1x1536xf32, #tpu.memory_space<vmem>>) attributes {dimension_semantics = [#tpu.dimension_semantics<parallel>], iteration_bounds = array<i64: 1>, scalar_prefetch = 0 : i64, scratch_operands = 0 : i64, tpu.core_type = #tpu.core_type<tc>, window_params = [{transform_indices = @transform_0, window_bounds = array<i64: 1536, 128>}, {pipeline_mode = #tpu.pipeline_mode<synchronous>, transform_indices = @transform_1, window_bounds = array<i64: 128, 1>}, {transform_indices = @transform_2, window_bounds = array<i64: 1, 1536>}]} {
    %c0 = arith.constant 0 : index
    %c0_0 = arith.constant 0 : index
    %0 = vector.load %arg1[%c0, %c0_0] : memref<1536x128xf32, #tpu.memory_space<vmem>>, vector<1536x128xf32>
    %c0_1 = arith.constant 0 : index
    %c0_2 = arith.constant 0 : index
    %1 = vector.load %arg2[%c0_1, %c0_2] : memref<128x1xf32, #tpu.memory_space<vmem>>, vector<128x1xf32>
    %cst = arith.constant dense<0.000000e+00> : vector<1536x1xf32>
    %2 = tpu.matmul %0, %1, %cst {dimension_numbers = #tpu.dot_dimension_numbers<[1], [0], [0], [1], [0, 0, 1, 1], [], []>} : vector<1536x128xf32>, vector<128x1xf32>, vector<1536x1xf32> -> vector<1536x1xf32>
    %3 = tpu.transpose %2, [1, 0] : vector<1536x1xf32> -> vector<1x1536xf32>
    %c0_3 = arith.constant 0 : index
    %c0_4 = arith.constant 0 : index
    %4 = vector.load %arg3[%c0_3, %c0_4] : memref<1x1536xf32, #tpu.memory_space<vmem>>, vector<1x1536xf32>
    tpu.vector_store %arg3[%c0_3, %c0_4], %3 {strides = array<i32>} : memref<1x1536xf32, #tpu.memory_space<vmem>>, vector<1x1536xf32>,
    return
  }
  func.func @transform_0(%arg0: i32) -> (i32, i32) {
    %c0_i32 = arith.constant 0 : i32
    %c0_i32_0 = arith.constant 0 : i32
    return %arg0, %c0_i32 : i32, i32
  }
  func.func @transform_1(%arg0: i32) -> (i32, i32) {
    %c0_i32 = arith.constant 0 : i32
    %c0_i32_0 = arith.constant 0 : i32
    %c0_i32_1 = arith.constant 0 : i32
    return %c0_i32, %c0_i32_0 : i32, i32
  }
  func.func @transform_2(%arg0: i32) -> (i32, i32) {
    %c0_i32 = arith.constant 0 : i32
    %c0_i32_0 = arith.constant 0 : i32
    return %c0_i32, %arg0 : i32, i32
  }
}

</mosaic_0001>

<bundles_post_ra>
// kernel: tpu_custom_call.1
= control target key start
LH: loop header
LB: loop body
LE: loop exit
PB: predicated region body
PF: predicated region fallthrough
CT: control target
= control target key end

     0   :  { %7 = vsyncpa [#allocation3], 0  ;;  %s2455_s0 = inlined_call_operand.hbm [shape: f32[1536,128], index: 0, kind: input, shape index: {}]   ;;  %s2456_s1 = inlined_call_operand.vmem [shape: f32[128,1], index: 1, kind: input, shape index: {}]   ;;  %s2457_s2 = inlined_call_operand.hbm [shape: f32[1,1536], index: 2, kind: output, shape index: {}]  }
   0x1   :  { %8 = vsyncpa [#allocation4], 0  ;;  %s2360_s9 = smov [#allocation2]  }
   0x2   :  { %s14_s10 = sshll.u32 %s2360_s9, 4  ;;  %s15_s10 = int_to_ptr.vmem [resolvable:$true] %s14_s10 }
   0x3   :  { %s2324_s11 = scalar_lea.vmem %s15_s10, 24576  ;;  %p2329_p1 = scmp.lt.s32.totalorder %s15_s10, %s15_s10 }
   0x4   :  { %p2325_p0 = scmp.ne.s32.totalorder %s15_s10, %s2324_s11  ;;  %p2330_p2 = scmp.lt.s32.totalorder %s2324_s11, %s2324_s11 }
   0x6   :  { %p2331_p3 = por %p2330_p2, %p2329_p1 }
   0x8   :  { %p2332_p4 = pnand %p2331_p3, %p2325_p0 }
   0xa   :  { %2335 = shalt.err (!%p2332_p4)
}
   0xb   :  { %s2361_s12 = smov 128   ;;  %s2362_s13 = smov 8  }
   0xc   :  { %20 = dma.hbm_to_vmem [thread:$0]  %s2455_s0, 24576, %s15_s10, [#allocation3], %s2361_s12, %s2361_s12, %s2362_s13  }
   0xd   :  { %2356 = dma.done.wait [#allocation3], 24576  }
   0xe   :  { %2357 = vsyncadd [#allocation3], 4294942720  ;;  %v233_v0 = vld [vmem:[%s2456_s1 + $0x78] sm:$0xff]  ;;  %v232_v1 = vld [vmem:[%s2456_s1 + $0x70] sm:$0xff] }
   0xf   :  { %1959 = vmatprep.subr.mxu0 %v233_v0  ;;  %2279 = vmatprep.subr.mxu1 %v233_v0  ;;  %v231_v2 = vld [vmem:[%s2456_s1 + $0x68] sm:$0xff]  ;;  %v230_v3 = vld [vmem:[%s2456_s1 + $0x60] sm:$0xff]  ;;  %v229_v5 = vld [vmem:[%s2456_s1 + $0x58] sm:$0xff] }
  0x10   :  { %1960 = vmatpush3.msra.mxu0 %v233_v0  ;;  %2295 = vmatpush3.msra.mxu1 %v233_v0  ;;  %v26_v4 = vld [vmem:[#allocation2] sm:$0xff]  ;;  %v228_v6 = vld [vmem:[%s2456_s1 + $0x50] sm:$0xff]  ;;  %v227_v7 = vld [vmem:[%s2456_s1 + $0x48] sm:$0xff] }
  0x11   :  { %1961 = vmatprep.subr.mxu0 %v232_v1  ;;  %2280 = vmatprep.subr.mxu1 %v232_v1  ;;  %v226_v8 = vld [vmem:[%s2456_s1 + $0x40] sm:$0xff]  ;;  %v225_v9 = vld [vmem:[%s2456_s1 + $0x38] sm:$0xff]  ;;  %v224_v10 = vld [vmem:[%s2456_s1 + $0x30] sm:$0xff] }
  0x12   :  { %1962 = vmatpush3.msra.mxu0 %v232_v1  ;;  %2296 = vmatpush3.msra.mxu1 %v232_v1  ;;  %v223_v11 = vld [vmem:[%s2456_s1 + $0x28] sm:$0xff]  ;;  %v222_v12 = vld [vmem:[%s2456_s1 + $0x20] sm:$0xff]  ;;  %v221_v13 = vld [vmem:[%s2456_s1 + $0x18] sm:$0xff] }
  0x13   :  { %1963 = vmatprep.subr.mxu0 %v231_v2  ;;  %2281 = vmatprep.subr.mxu1 %v231_v2  ;;  %v220_v14 = vld [vmem:[%s2456_s1 + $0x10] sm:$0xff]  ;;  %v219_v15 = vld [vmem:[%s2456_s1 + $0x8] sm:$0xff]  ;;  %v218_v16 = vld [vmem:[%s2456_s1] sm:$0xff]  ;;  %s2364_s1 = smov [#allocation5]  }
  0x14   :  { %1964 = vmatpush3.msra.mxu0 %v231_v2  ;;  %1991 = vmatprep.mubr.f32.mxu0 %v26_v4  ;;  %v27_v17 = vld [vmem:[#allocation2 + $0x8] sm:$0xff]  ;;  %v28_v18 = vld [vmem:[#allocation2 + $0x10] sm:$0xff]  ;;  %v122_v19 = vld [vmem:[#allocation2 + $0x300] sm:$0xff]  ;;  %s1742_s19 = sshll.u32 %s2364_s1, 4  ;;  %s1743_s19 = int_to_ptr.vmem [resolvable:$true] %s1742_s19 }
  0x15   :  { %1965 = vmatprep.subr.mxu0 %v230_v3  ;;  %2297 = vmatpush3.msra.mxu1 %v231_v2  ;;  %v123_v20 = vld [vmem:[#allocation2 + $0x308] sm:$0xff]  ;;  %v124_v21 = vld [vmem:[#allocation2 + $0x310] sm:$0xff]  ;;  %v29_v22 = vld [vmem:[#allocation2 + $0x18] sm:$0xff]  ;;  %s2336_s20 = scalar_lea.vmem %s1743_s19, 192  ;;  %p2341_p6 = scmp.lt.s32.totalorder %s1743_s19, %s1743_s19 }
  0x16   :  { %1966 = vmatpush3.msra.mxu0 %v230_v3  ;;  %2282 = vmatprep.subr.mxu1 %v230_v3  ;;  %v30_v23 = vld [vmem:[#allocation2 + $0x20] sm:$0xff]  ;;  %v125_v24 = vld [vmem:[#allocation2 + $0x318] sm:$0xff]  ;;  %v31_v26 = vld [vmem:[#allocation2 + $0x28] sm:$0xff]  ;;  %p2337_p5 = scmp.ne.s32.totalorder %s1743_s19, %s2336_s20  ;;  %p2342_p7 = scmp.lt.s32.totalorder %s2336_s20, %s2336_s20 }
  0x17   :  { %1967 = vmatprep.subr.mxu0 %v229_v5  ;;  %2298 = vmatpush3.msra.mxu1 %v230_v3  ;;  %v126_v25 = vld [vmem:[#allocation2 + $0x320] sm:$0xff]  ;;  %v32_v27 = vld [vmem:[#allocation2 + $0x30] sm:$0xff]  ;;  %v127_v28 = vld [vmem:[#allocation2 + $0x328] sm:$0xff] }
  0x18   :  { %1968 = vmatpush3.msra.mxu0 %v229_v5  ;;  %2283 = vmatprep.subr.mxu1 %v229_v5  ;;  %v128_v29 = vld [vmem:[#allocation2 + $0x330] sm:$0xff]  ;;  %v33_v30 = vld [vmem:[#allocation2 + $0x38] sm:$0xff]  ;;  %v34_v31 = vld [vmem:[#allocation2 + $0x40] sm:$0xff]  ;;  %p2343_p8 = por %p2342_p7, %p2341_p6 }
  0x19   :  { %1969 = vmatprep.subr.mxu0 %v228_v6  ;;  %2299 = vmatpush3.msra.mxu1 %v229_v5  ;;  %v129_v32 = vld [vmem:[#allocation2 + $0x338] sm:$0xff]  ;;  %v130_v33 = vld [vmem:[#allocation2 + $0x340] sm:$0xff]  ;;  %v35_v34 = vld [vmem:[#allocation2 + $0x48] sm:$0xff] }
  0x1a   :  { %1970 = vmatpush3.msra.mxu0 %v228_v6  ;;  %2284 = vmatprep.subr.mxu1 %v228_v6  ;;  %v36_v35 = vld [vmem:[#allocation2 + $0x50] sm:$0xff]  ;;  %v131_v36 = vld [vmem:[#allocation2 + $0x348] sm:$0xff]  ;;  %v37_v38 = vld [vmem:[#allocation2 + $0x58] sm:$0xff]  ;;  %p2344_p9 = pnand %p2343_p8, %p2337_p5 }
  0x1b   :  { %1971 = vmatprep.subr.mxu0 %v227_v7  ;;  %2300 = vmatpush3.msra.mxu1 %v228_v6  ;;  %v132_v37 = vld [vmem:[#allocation2 + $0x350] sm:$0xff]  ;;  %v38_v39 = vld [vmem:[#allocation2 + $0x60] sm:$0xff]  ;;  %v133_v40 = vld [vmem:[#allocation2 + $0x358] sm:$0xff] }
  0x1c   :  { %1972 = vmatpush3.msra.mxu0 %v227_v7  ;;  %2285 = vmatprep.subr.mxu1 %v227_v7  ;;  %v134_v41 = vld [vmem:[#allocation2 + $0x360] sm:$0xff]  ;;  %v39_v42 = vld [vmem:[#allocation2 + $0x68] sm:$0xff]  ;;  %v40_v43 = vld [vmem:[#allocation2 + $0x70] sm:$0xff] }
  0x1d   :  { %1973 = vmatprep.subr.mxu0 %v226_v8  ;;  %2301 = vmatpush3.msra.mxu1 %v227_v7  ;;  %v135_v44 = vld [vmem:[#allocation2 + $0x368] sm:$0xff]  ;;  %v136_v45 = vld [vmem:[#allocation2 + $0x370] sm:$0xff]  ;;  %v41_v46 = vld [vmem:[#allocation2 + $0x78] sm:$0xff] }
  0x1e   :  { %1974 = vmatpush3.msra.mxu0 %v226_v8  ;;  %2286 = vmatprep.subr.mxu1 %v226_v8  ;;  %v42_v47 = vld [vmem:[#allocation2 + $0x80] sm:$0xff]  ;;  %v137_v48 = vld [vmem:[#allocation2 + $0x378] sm:$0xff]  ;;  %v43_v50 = vld [vmem:[#allocation2 + $0x88] sm:$0xff] }
  0x1f   :  { %1975 = vmatprep.subr.mxu0 %v225_v9  ;;  %2302 = vmatpush3.msra.mxu1 %v226_v8  ;;  %v138_v49 = vld [vmem:[#allocation2 + $0x380] sm:$0xff]  ;;  %v44_v51 = vld [vmem:[#allocation2 + $0x90] sm:$0xff]  ;;  %v139_v52 = vld [vmem:[#allocation2 + $0x388] sm:$0xff] }
  0x20   :  { %1976 = vmatpush3.msra.mxu0 %v225_v9  ;;  %2287 = vmatprep.subr.mxu1 %v225_v9  ;;  %v140_v53 = vld [vmem:[#allocation2 + $0x390] sm:$0xff]  ;;  %v45_v54 = vld [vmem:[#allocation2 + $0x98] sm:$0xff]  ;;  %v46_v55 = vld [vmem:[#allocation2 + $0xa0] sm:$0xff] }
  0x21   :  { %1977 = vmatprep.subr.mxu0 %v224_v10  ;;  %2303 = vmatpush3.msra.mxu1 %v225_v9  ;;  %v141_v56 = vld [vmem:[#allocation2 + $0x398] sm:$0xff]  ;;  %v142_v57 = vld [vmem:[#allocation2 + $0x3a0] sm:$0xff]  ;;  %v47_v58 = vld [vmem:[#allocation2 + $0xa8] sm:$0xff] }
  0x22   :  { %1978 = vmatpush3.msra.mxu0 %v224_v10  ;;  %2288 = vmatprep.subr.mxu1 %v224_v10  ;;  %v48_v59 = vld [vmem:[#allocation2 + $0xb0] sm:$0xff]  ;;  %v143_v60 = vld [vmem:[#allocation2 + $0x3a8] sm:$0xff]  ;;  %v49_v62 = vld [vmem:[#allocation2 + $0xb8] sm:$0xff] }
  0x23   :  { %1979 = vmatprep.subr.mxu0 %v223_v11  ;;  %2304 = vmatpush3.msra.mxu1 %v224_v10  ;;  %v144_v61 = vld [vmem:[#allocation2 + $0x3b0] sm:$0xff]  ;;  %v50_v63 = vld [vmem:[#allocation2 + $0xc0] sm:$0xff]  ;;  %v145_v0 = vld [vmem:[#allocation2 + $0x3b8] sm:$0xff] }
  0x24   :  { %1980 = vmatpush3.msra.mxu0 %v223_v11  ;;  %2289 = vmatprep.subr.mxu1 %v223_v11  ;;  %v146_v1 = vld [vmem:[#allocation2 + $0x3c0] sm:$0xff]  ;;  %v51_v2 = vld [vmem:[#allocation2 + $0xc8] sm:$0xff]  ;;  %v52_v3 = vld [vmem:[#allocation2 + $0xd0] sm:$0xff] }
  0x25   :  { %1981 = vmatprep.subr.mxu0 %v222_v12  ;;  %2305 = vmatpush3.msra.mxu1 %v223_v11  ;;  %v147_v4 = vld [vmem:[#allocation2 + $0x3c8] sm:$0xff]  ;;  %v148_v5 = vld [vmem:[#allocation2 + $0x3d0] sm:$0xff]  ;;  %v53_v6 = vld [vmem:[#allocation2 + $0xd8] sm:$0xff] }
  0x26   :  { %1982 = vmatpush3.msra.mxu0 %v222_v12  ;;  %2290 = vmatprep.subr.mxu1 %v222_v12  ;;  %v54_v7 = vld [vmem:[#allocation2 + $0xe0] sm:$0xff]  ;;  %v149_v8 = vld [vmem:[#allocation2 + $0x3d8] sm:$0xff]  ;;  %v55_v10 = vld [vmem:[#allocation2 + $0xe8] sm:$0xff] }
  0x27   :  { %1983 = vmatprep.subr.mxu0 %v221_v13  ;;  %2306 = vmatpush3.msra.mxu1 %v222_v12  ;;  %v150_v9 = vld [vmem:[#allocation2 + $0x3e0] sm:$0xff]  ;;  %v56_v11 = vld [vmem:[#allocation2 + $0xf0] sm:$0xff]  ;;  %v151_v12 = vld [vmem:[#allocation2 + $0x3e8] sm:$0xff] }
  0x28   :  { %1984 = vmatpush3.msra.mxu0 %v221_v13  ;;  %2291 = vmatprep.subr.mxu1 %v221_v13 }
  0x29   :  { %1985 = vmatprep.subr.mxu0 %v220_v14  ;;  %2307 = vmatpush3.msra.mxu1 %v221_v13  ;;  %v152_v13 = vld [vmem:[#allocation2 + $0x3f0] sm:$0xff] }
  0x2a   :  { %1986 = vmatpush3.msra.mxu0 %v220_v14  ;;  %2292 = vmatprep.subr.mxu1 %v220_v14 }
  0x2b   :  { %1987 = vmatprep.subr.mxu0 %v219_v15  ;;  %2308 = vmatpush3.msra.mxu1 %v220_v14  ;;  %v57_v14 = vld [vmem:[#allocation2 + $0xf8] sm:$0xff] }
  0x2c   :  { %1988 = vmatpush3.msra.mxu0 %v219_v15  ;;  %2293 = vmatprep.subr.mxu1 %v219_v15 }
  0x2d   :  { %1989 = vmatprep.subr.mxu0 %v218_v16  ;;  %2309 = vmatpush3.msra.mxu1 %v219_v15  ;;  %v58_v15 = vld [vmem:[#allocation2 + $0x100] sm:$0xff] }
  0x2e   :  { %1990 = vmatpush3.msra.mxu0 %v218_v16  ;;  %2294 = vmatprep.subr.mxu1 %v218_v16 }
  0x2f   :  { %1992 = vmatmul.mubr.f32.vlgmr.msra.gmra.mxu0 %v27_v17  ;;  %2310 = vmatpush3.msra.mxu1 %v218_v16  ;;  %v153_v16 = vld [vmem:[#allocation2 + $0x3f8] sm:$0xff]  ;;  %v154_v17 = vld [vmem:[#allocation2 + $0x400] sm:$0xff] }
  0x30   :  { %1994 = vmatprep.mubr.f32.mxu0 %v28_v18  ;;  %2135 = vmatprep.mubr.f32.mxu1 %v122_v19  ;;  %v59_v18 = vld [vmem:[#allocation2 + $0x108] sm:$0xff]  ;;  %v60_v19 = vld [vmem:[#allocation2 + $0x110] sm:$0xff] }
  0x31   :  { %2136 = vmatmul.mubr.f32.vlgmr.msra.gmra.mxu1 %v123_v20  ;;  %v155_v20 = vld [vmem:[#allocation2 + $0x408] sm:$0xff] }
  0x32   :  { %2138 = vmatprep.mubr.f32.mxu1 %v124_v21  ;;  %v156_v21 = vld [vmem:[#allocation2 + $0x410] sm:$0xff] }
  0x33   :  { %1995 = vmatmul.mubr.f32.gmra.mxu0 %v29_v22  ;;  %v61_v22 = vld [vmem:[#allocation2 + $0x118] sm:$0xff] }
  0x34   :  { %1997 = vmatprep.mubr.f32.mxu0 %v30_v23  ;;  %v62_v23 = vld [vmem:[#allocation2 + $0x120] sm:$0xff] }
  0x35   :  { %2139 = vmatmul.mubr.f32.gmra.mxu1 %v125_v24  ;;  %v157_v24 = vld [vmem:[#allocation2 + $0x418] sm:$0xff] }
  0x36   :  { %2141 = vmatprep.mubr.f32.mxu1 %v126_v25  ;;  %v158_v25 = vld [vmem:[#allocation2 + $0x420] sm:$0xff] }
  0x37   :  { %1998 = vmatmul.mubr.f32.gmra.mxu0 %v31_v26  ;;  %v63_v26 = vld [vmem:[#allocation2 + $0x128] sm:$0xff] }
  0x38   :  { %2000 = vmatprep.mubr.f32.mxu0 %v32_v27  ;;  %v64_v27 = vld [vmem:[#allocation2 + $0x130] sm:$0xff] }
  0x39   :  { %2142 = vmatmul.mubr.f32.gmra.mxu1 %v127_v28  ;;  %v159_v28 = vld [vmem:[#allocation2 + $0x428] sm:$0xff] }
  0x3a   :  { %2144 = vmatprep.mubr.f32.mxu1 %v128_v29  ;;  %v160_v29 = vld [vmem:[#allocation2 + $0x430] sm:$0xff] }
  0x3b   :  { %2001 = vmatmul.mubr.f32.gmra.mxu0 %v33_v30  ;;  %v65_v30 = vld [vmem:[#allocation2 + $0x138] sm:$0xff] }
  0x3c   :  { %2003 = vmatprep.mubr.f32.mxu0 %v34_v31  ;;  %v66_v31 = vld [vmem:[#allocation2 + $0x140] sm:$0xff] }
  0x3d   :  { %2145 = vmatmul.mubr.f32.gmra.mxu1 %v129_v32  ;;  %v161_v32 = vld [vmem:[#allocation2 + $0x438] sm:$0xff] }
  0x3e   :  { %2147 = vmatprep.mubr.f32.mxu1 %v130_v33  ;;  %v162_v33 = vld [vmem:[#allocation2 + $0x440] sm:$0xff] }
  0x3f   :  { %2004 = vmatmul.mubr.f32.gmra.mxu0 %v35_v34  ;;  %v67_v34 = vld [vmem:[#allocation2 + $0x148] sm:$0xff] }
  0x40   :  { %2006 = vmatprep.mubr.f32.mxu0 %v36_v35  ;;  %v68_v35 = vld [vmem:[#allocation2 + $0x150] sm:$0xff] }
  0x41   :  { %2148 = vmatmul.mubr.f32.gmra.mxu1 %v131_v36  ;;  %v163_v36 = vld [vmem:[#allocation2 + $0x448] sm:$0xff] }
  0x42   :  { %2150 = vmatprep.mubr.f32.mxu1 %v132_v37  ;;  %v164_v37 = vld [vmem:[#allocation2 + $0x450] sm:$0xff] }
  0x43   :  { %2007 = vmatmul.mubr.f32.gmra.mxu0 %v37_v38  ;;  %v69_v38 = vld [vmem:[#allocation2 + $0x158] sm:$0xff] }
  0x44   :  { %2009 = vmatprep.mubr.f32.mxu0 %v38_v39  ;;  %v70_v39 = vld [vmem:[#allocation2 + $0x160] sm:$0xff] }
  0x45   :  { %2151 = vmatmul.mubr.f32.gmra.mxu1 %v133_v40  ;;  %v165_v40 = vld [vmem:[#allocation2 + $0x458] sm:$0xff] }
  0x46   :  { %2153 = vmatprep.mubr.f32.mxu1 %v134_v41  ;;  %v166_v41 = vld [vmem:[#allocation2 + $0x460] sm:$0xff] }
  0x47   :  { %2010 = vmatmul.mubr.f32.gmra.mxu0 %v39_v42  ;;  %v71_v42 = vld [vmem:[#allocation2 + $0x168] sm:$0xff] }
  0x48   :  { %2012 = vmatprep.mubr.f32.mxu0 %v40_v43  ;;  %v72_v43 = vld [vmem:[#allocation2 + $0x170] sm:$0xff] }
  0x49   :  { %2154 = vmatmul.mubr.f32.gmra.mxu1 %v135_v44  ;;  %v167_v44 = vld [vmem:[#allocation2 + $0x468] sm:$0xff] }
  0x4a   :  { %2156 = vmatprep.mubr.f32.mxu1 %v136_v45  ;;  %v168_v45 = vld [vmem:[#allocation2 + $0x470] sm:$0xff] }
  0x4b   :  { %2013 = vmatmul.mubr.f32.gmra.mxu0 %v41_v46  ;;  %v73_v46 = vld [vmem:[#allocation2 + $0x178] sm:$0xff] }
  0x4c   :  { %2015 = vmatprep.mubr.f32.mxu0 %v42_v47  ;;  %v74_v47 = vld [vmem:[#allocation2 + $0x180] sm:$0xff] }
  0x4d   :  { %2157 = vmatmul.mubr.f32.gmra.mxu1 %v137_v48  ;;  %v169_v48 = vld [vmem:[#allocation2 + $0x478] sm:$0xff] }
  0x4e   :  { %2159 = vmatprep.mubr.f32.mxu1 %v138_v49  ;;  %v170_v49 = vld [vmem:[#allocation2 + $0x480] sm:$0xff] }
  0x4f   :  { %2016 = vmatmul.mubr.f32.gmra.mxu0 %v43_v50  ;;  %v75_v50 = vld [vmem:[#allocation2 + $0x188] sm:$0xff] }
  0x50   :  { %2018 = vmatprep.mubr.f32.mxu0 %v44_v51  ;;  %v76_v51 = vld [vmem:[#allocation2 + $0x190] sm:$0xff] }
  0x51   :  { %2160 = vmatmul.mubr.f32.gmra.mxu1 %v139_v52  ;;  %v171_v52 = vld [vmem:[#allocation2 + $0x488] sm:$0xff] }
  0x52   :  { %2162 = vmatprep.mubr.f32.mxu1 %v140_v53  ;;  %v77_v53 = vld [vmem:[#allocation2 + $0x198] sm:$0xff] }
  0x53   :  { %2019 = vmatmul.mubr.f32.gmra.mxu0 %v45_v54  ;;  %v78_v54 = vld [vmem:[#allocation2 + $0x1a0] sm:$0xff] }
  0x54   :  { %2021 = vmatprep.mubr.f32.mxu0 %v46_v55  ;;  %v172_v55 = vld [vmem:[#allocation2 + $0x490] sm:$0xff] }
  0x55   :  { %2163 = vmatmul.mubr.f32.gmra.mxu1 %v141_v56  ;;  %v173_v56 = vld [vmem:[#allocation2 + $0x498] sm:$0xff] }
  0x56   :  { %2165 = vmatprep.mubr.f32.mxu1 %v142_v57  ;;  %v79_v57 = vld [vmem:[#allocation2 + $0x1a8] sm:$0xff] }
  0x57   :  { %2022 = vmatmul.mubr.f32.gmra.mxu0 %v47_v58  ;;  %v80_v58 = vld [vmem:[#allocation2 + $0x1b0] sm:$0xff] }
  0x58   :  { %2024 = vmatprep.mubr.f32.mxu0 %v48_v59  ;;  %v81_v59 = vld [vmem:[#allocation2 + $0x1b8] sm:$0xff] }
  0x59   :  { %2166 = vmatmul.mubr.f32.gmra.mxu1 %v143_v60  ;;  %v82_v60 = vld [vmem:[#allocation2 + $0x1c0] sm:$0xff] }
  0x5a   :  { %2168 = vmatprep.mubr.f32.mxu1 %v144_v61  ;;  %v174_v61 = vld [vmem:[#allocation2 + $0x4a0] sm:$0xff] }
  0x5b   :  { %2025 = vmatmul.mubr.f32.gmra.mxu0 %v49_v62  ;;  %v175_v62 = vld [vmem:[#allocation2 + $0x4a8] sm:$0xff] }
  0x5c   :  { %2027 = vmatprep.mubr.f32.mxu0 %v50_v63  ;;  %v83_v63 = vld [vmem:[#allocation2 + $0x1c8] sm:$0xff] }
  0x5d   :  { %2169 = vmatmul.mubr.f32.gmra.mxu1 %v145_v0  ;;  %v84_v0 = vld [vmem:[#allocation2 + $0x1d0] sm:$0xff] }
  0x5e   :  { %2171 = vmatprep.mubr.f32.mxu1 %v146_v1  ;;  %v85_v1 = vld [vmem:[#allocation2 + $0x1d8] sm:$0xff] }
  0x5f   :  { %2028 = vmatmul.mubr.f32.gmra.mxu0 %v51_v2  ;;  %v86_v2 = vld [vmem:[#allocation2 + $0x1e0] sm:$0xff] }
  0x60   :  { %2030 = vmatprep.mubr.f32.mxu0 %v52_v3  ;;  %v176_v3 = vld [vmem:[#allocation2 + $0x4b0] sm:$0xff] }
  0x61   :  { %2172 = vmatmul.mubr.f32.gmra.mxu1 %v147_v4  ;;  %v177_v4 = vld [vmem:[#allocation2 + $0x4b8] sm:$0xff] }
  0x62   :  { %2174 = vmatprep.mubr.f32.mxu1 %v148_v5  ;;  %v87_v5 = vld [vmem:[#allocation2 + $0x1e8] sm:$0xff] }
  0x63   :  { %2031 = vmatmul.mubr.f32.gmra.mxu0 %v53_v6  ;;  %v88_v6 = vld [vmem:[#allocation2 + $0x1f0] sm:$0xff] }
  0x64   :  { %2033 = vmatprep.mubr.f32.mxu0 %v54_v7  ;;  %v89_v7 = vld [vmem:[#allocation2 + $0x1f8] sm:$0xff] }
  0x65   :  { %2175 = vmatmul.mubr.f32.gmra.mxu1 %v149_v8  ;;  %v90_v8 = vld [vmem:[#allocation2 + $0x200] sm:$0xff] }
  0x66   :  { %2177 = vmatprep.mubr.f32.mxu1 %v150_v9  ;;  %v178_v9 = vld [vmem:[#allocation2 + $0x4c0] sm:$0xff] }
  0x67   :  { %2034 = vmatmul.mubr.f32.gmra.mxu0 %v55_v10  ;;  %v179_v10 = vld [vmem:[#allocation2 + $0x4c8] sm:$0xff] }
  0x68   :  { %2036 = vmatprep.mubr.f32.mxu0 %v56_v11  ;;  %v91_v11 = vld [vmem:[#allocation2 + $0x208] sm:$0xff] }
  0x69   :  { %2178 = vmatmul.mubr.f32.gmra.mxu1 %v151_v12  ;;  %v92_v12 = vld [vmem:[#allocation2 + $0x210] sm:$0xff] }
  0x6a   :  { %2180 = vmatprep.mubr.f32.mxu1 %v152_v13  ;;  %v93_v13 = vld [vmem:[#allocation2 + $0x218] sm:$0xff] }
  0x6b   :  { %2037 = vmatmul.mubr.f32.gmra.mxu0 %v57_v14  ;;  %v94_v14 = vld [vmem:[#allocation2 + $0x220] sm:$0xff] }
  0x6c   :  { %2039 = vmatprep.mubr.f32.mxu0 %v58_v15  ;;  %v180_v15 = vld [vmem:[#allocation2 + $0x4d0] sm:$0xff] }
  0x6d   :  { %2181 = vmatmul.mubr.f32.gmra.mxu1 %v153_v16  ;;  %v181_v16 = vld [vmem:[#allocation2 + $0x4d8] sm:$0xff] }
  0x6e   :  { %2183 = vmatprep.mubr.f32.mxu1 %v154_v17  ;;  %v95_v17 = vld [vmem:[#allocation2 + $0x228] sm:$0xff] }
  0x6f   :  { %2040 = vmatmul.mubr.f32.gmra.mxu0 %v59_v18  ;;  %v96_v18 = vld [vmem:[#allocation2 + $0x230] sm:$0xff] }
  0x70   :  { %2042 = vmatprep.mubr.f32.mxu0 %v60_v19  ;;  %v97_v19 = vld [vmem:[#allocation2 + $0x238] sm:$0xff] }
  0x71   :  { %2184 = vmatmul.mubr.f32.gmra.mxu1 %v155_v20  ;;  %v98_v20 = vld [vmem:[#allocation2 + $0x240] sm:$0xff] }
  0x72   :  { %2186 = vmatprep.mubr.f32.mxu1 %v156_v21  ;;  %v182_v21 = vld [vmem:[#allocation2 + $0x4e0] sm:$0xff] }
  0x73   :  { %2043 = vmatmul.mubr.f32.gmra.mxu0 %v61_v22  ;;  %v183_v22 = vld [vmem:[#allocation2 + $0x4e8] sm:$0xff] }
  0x74   :  { %2045 = vmatprep.mubr.f32.mxu0 %v62_v23  ;;  %v99_v23 = vld [vmem:[#allocation2 + $0x248] sm:$0xff] }
  0x75   :  { %2187 = vmatmul.mubr.f32.gmra.mxu1 %v157_v24  ;;  %v100_v24 = vld [vmem:[#allocation2 + $0x250] sm:$0xff] }
  0x76   :  { %2189 = vmatprep.mubr.f32.mxu1 %v158_v25  ;;  %v101_v25 = vld [vmem:[#allocation2 + $0x258] sm:$0xff] }
  0x77   :  { %2046 = vmatmul.mubr.f32.gmra.mxu0 %v63_v26  ;;  %v102_v26 = vld [vmem:[#allocation2 + $0x260] sm:$0xff] }
  0x78   :  { %2048 = vmatprep.mubr.f32.mxu0 %v64_v27  ;;  %v184_v27 = vld [vmem:[#allocation2 + $0x4f0] sm:$0xff] }
  0x79   :  { %2190 = vmatmul.mubr.f32.gmra.mxu1 %v159_v28  ;;  %v185_v28 = vld [vmem:[#allocation2 + $0x4f8] sm:$0xff] }
  0x7a   :  { %2192 = vmatprep.mubr.f32.mxu1 %v160_v29  ;;  %v103_v29 = vld [vmem:[#allocation2 + $0x268] sm:$0xff] }
  0x7b   :  { %2049 = vmatmul.mubr.f32.gmra.mxu0 %v65_v30  ;;  %v104_v30 = vld [vmem:[#allocation2 + $0x270] sm:$0xff] }
  0x7c   :  { %2051 = vmatprep.mubr.f32.mxu0 %v66_v31  ;;  %v105_v31 = vld [vmem:[#allocation2 + $0x278] sm:$0xff] }
  0x7d   :  { %2193 = vmatmul.mubr.f32.gmra.mxu1 %v161_v32  ;;  %v106_v32 = vld [vmem:[#allocation2 + $0x280] sm:$0xff] }
  0x7e   :  { %2195 = vmatprep.mubr.f32.mxu1 %v162_v33  ;;  %v107_v33 = vld [vmem:[#allocation2 + $0x288] sm:$0xff] }
  0x7f   :  { %2052 = vmatmul.mubr.f32.gmra.mxu0 %v67_v34  ;;  %v108_v34 = vld [vmem:[#allocation2 + $0x290] sm:$0xff] }
  0x80   :  { %2054 = vmatprep.mubr.f32.mxu0 %v68_v35  ;;  %v109_v35 = vld [vmem:[#allocation2 + $0x298] sm:$0xff] }
  0x81   :  { %2196 = vmatmul.mubr.f32.gmra.mxu1 %v163_v36  ;;  %v110_v36 = vld [vmem:[#allocation2 + $0x2a0] sm:$0xff] }
  0x82   :  { %2198 = vmatprep.mubr.f32.mxu1 %v164_v37  ;;  %v111_v37 = vld [vmem:[#allocation2 + $0x2a8] sm:$0xff] }
  0x83   :  { %2055 = vmatmul.mubr.f32.gmra.mxu0 %v69_v38  ;;  %v112_v38 = vld [vmem:[#allocation2 + $0x2b0] sm:$0xff] }
  0x84   :  { %2057 = vmatprep.mubr.f32.mxu0 %v70_v39  ;;  %v113_v39 = vld [vmem:[#allocation2 + $0x2b8] sm:$0xff] }
  0x85   :  { %2199 = vmatmul.mubr.f32.gmra.mxu1 %v165_v40  ;;  %v114_v40 = vld [vmem:[#allocation2 + $0x2c0] sm:$0xff] }
  0x86   :  { %2201 = vmatprep.mubr.f32.mxu1 %v166_v41  ;;  %v186_v41 = vld [vmem:[#allocation2 + $0x500] sm:$0xff] }
  0x87   :  { %2058 = vmatmul.mubr.f32.gmra.mxu0 %v71_v42  ;;  %v115_v42 = vld [vmem:[#allocation2 + $0x2c8] sm:$0xff] }
  0x88   :  { %2060 = vmatprep.mubr.f32.mxu0 %v72_v43  ;;  %v187_v43 = vld [vmem:[#allocation2 + $0x508] sm:$0xff] }
  0x89   :  { %2202 = vmatmul.mubr.f32.gmra.mxu1 %v167_v44  ;;  %v188_v44 = vld [vmem:[#allocation2 + $0x510] sm:$0xff] }
  0x8a   :  { %2204 = vmatprep.mubr.f32.mxu1 %v168_v45  ;;  %v189_v45 = vld [vmem:[#allocation2 + $0x518] sm:$0xff] }
  0x8b   :  { %2061 = vmatmul.mubr.f32.gmra.mxu0 %v73_v46 }
  0x8c   :  { %2063 = vmatprep.mubr.f32.mxu0 %v74_v47 }
  0x8d   :  { %2205 = vmatmul.mubr.f32.gmra.mxu1 %v169_v48  ;;  %v116_v48 = vld [vmem:[#allocation2 + $0x2d0] sm:$0xff] }
  0x8e   :  { %2207 = vmatprep.mubr.f32.mxu1 %v170_v49  ;;  %v190_v49 = vld [vmem:[#allocation2 + $0x520] sm:$0xff] }
  0x8f   :  { %2064 = vmatmul.mubr.f32.gmra.mxu0 %v75_v50  ;;  %v117_v50 = vld [vmem:[#allocation2 + $0x2d8] sm:$0xff] }
  0x90   :  { %2066 = vmatprep.mubr.f32.mxu0 %v76_v51 }
  0x91   :  { %2208 = vmatmul.mubr.f32.gmra.mxu1 %v171_v52  ;;  %v191_v52 = vld [vmem:[#allocation2 + $0x528] sm:$0xff] }
  0x92   :  { %2210 = vmatprep.mubr.f32.mxu1 %v172_v55  ;;  %v193_v55 = vld [vmem:[#allocation2 + $0x538] sm:$0xff] }
  0x93   :  { %2067 = vmatmul.mubr.f32.gmra.mxu0 %v77_v53 }
  0x94   :  { %2069 = vmatprep.mubr.f32.mxu0 %v78_v54  ;;  %v192_v54 = vld [vmem:[#allocation2 + $0x530] sm:$0xff] }
  0x95   :  { %2211 = vmatmul.mubr.f32.gmra.mxu1 %v173_v56 }
  0x96   :  { %2213 = vmatprep.mubr.f32.mxu1 %v174_v61 }
  0x97   :  { %2070 = vmatmul.mubr.f32.gmra.mxu0 %v79_v57 }
  0x98   :  { %2072 = vmatprep.mubr.f32.mxu0 %v80_v58  ;;  %v118_v58 = vld [vmem:[#allocation2 + $0x2e0] sm:$0xff] }
  0x99   :  { %2214 = vmatmul.mubr.f32.gmra.mxu1 %v175_v62  ;;  %v195_v62 = vld [vmem:[#allocation2 + $0x548] sm:$0xff] }
  0x9a   :  { %2216 = vmatprep.mubr.f32.mxu1 %v176_v3 }
  0x9b   :  { %2073 = vmatmul.mubr.f32.gmra.mxu0 %v81_v59  ;;  %v194_v59 = vld [vmem:[#allocation2 + $0x540] sm:$0xff] }
  0x9c   :  { %2075 = vmatprep.mubr.f32.mxu0 %v82_v60  ;;  %v119_v60 = vld [vmem:[#allocation2 + $0x2e8] sm:$0xff] }
  0x9d   :  { %2217 = vmatmul.mubr.f32.gmra.mxu1 %v177_v4  ;;  %v120_v4 = vld [vmem:[#allocation2 + $0x2f0] sm:$0xff] }
  0x9e   :  { %2219 = vmatprep.mubr.f32.mxu1 %v178_v9 }
  0x9f   :  { %2076 = vmatmul.mubr.f32.gmra.mxu0 %v83_v63 }
  0xa0   :  { %2078 = vmatprep.mubr.f32.mxu0 %v84_v0  ;;  %v196_v0 = vld [vmem:[#allocation2 + $0x550] sm:$0xff] }
  0xa1   :  { %2220 = vmatmul.mubr.f32.gmra.mxu1 %v179_v10  ;;  %v200_v10 = vld [vmem:[#allocation2 + $0x570] sm:$0xff] }
  0xa2   :  { %2222 = vmatprep.mubr.f32.mxu1 %v180_v15  ;;  %v203_v15 = vld [vmem:[#allocation2 + $0x588] sm:$0xff] }
  0xa3   :  { %2079 = vmatmul.mubr.f32.gmra.mxu0 %v85_v1  ;;  %v197_v1 = vld [vmem:[#allocation2 + $0x558] sm:$0xff] }
  0xa4   :  { %2081 = vmatprep.mubr.f32.mxu0 %v86_v2 }
  0xa5   :  { %2223 = vmatmul.mubr.f32.gmra.mxu1 %v181_v16 }
  0xa6   :  { %2225 = vmatprep.mubr.f32.mxu1 %v182_v21 }
  0xa7   :  { %2082 = vmatmul.mubr.f32.gmra.mxu0 %v87_v5  ;;  %v198_v5 = vld [vmem:[#allocation2 + $0x560] sm:$0xff] }
  0xa8   :  { %2084 = vmatprep.mubr.f32.mxu0 %v88_v6  ;;  %v121_v6 = vld [vmem:[#allocation2 + $0x2f8] sm:$0xff] }
  0xa9   :  { %2226 = vmatmul.mubr.f32.gmra.mxu1 %v183_v22  ;;  %v204_v22 = vld [vmem:[#allocation2 + $0x590] sm:$0xff] }
  0xaa   :  { %2228 = vmatprep.mubr.f32.mxu1 %v184_v27 }
  0xab   :  { %2085 = vmatmul.mubr.f32.gmra.mxu0 %v89_v7 }
  0xac   :  { %2087 = vmatprep.mubr.f32.mxu0 %v90_v8  ;;  %v199_v8 = vld [vmem:[#allocation2 + $0x568] sm:$0xff] }
  0xad   :  { %2229 = vmatmul.mubr.f32.gmra.mxu1 %v185_v28  ;;  %v206_v28 = vld [vmem:[#allocation2 + $0x5a0] sm:$0xff] }
  0xae   :  { %2231 = vmatprep.mubr.f32.mxu1 %v186_v41  ;;  %v211_v41 = vld [vmem:[#allocation2 + $0x5c8] sm:$0xff] }
  0xaf   :  { %2088 = vmatmul.mubr.f32.gmra.mxu0 %v91_v11  ;;  %v201_v11 = vld [vmem:[#allocation2 + $0x578] sm:$0xff] }
  0xb0   :  { %2090 = vmatprep.mubr.f32.mxu0 %v92_v12 }
  0xb1   :  { %2232 = vmatmul.mubr.f32.gmra.mxu1 %v187_v43 }
  0xb2   :  { %2234 = vmatprep.mubr.f32.mxu1 %v188_v44 }
  0xb3   :  { %2091 = vmatmul.mubr.f32.gmra.mxu0 %v93_v13 }
  0xb4   :  { %2093 = vmatprep.mubr.f32.mxu0 %v94_v14  ;;  %v202_v14 = vld [vmem:[#allocation2 + $0x580] sm:$0xff] }
  0xb5   :  { %2235 = vmatmul.mubr.f32.gmra.mxu1 %v189_v45 }
  0xb6   :  { %2237 = vmatprep.mubr.f32.mxu1 %v190_v49 }
  0xb7   :  { %2094 = vmatmul.mubr.f32.gmra.mxu0 %v95_v17 }
  0xb8   :  { %2096 = vmatprep.mubr.f32.mxu0 %v96_v18 }
  0xb9   :  { %2238 = vmatmul.mubr.f32.gmra.mxu1 %v191_v52  ;;  %v214_v52 = vld [vmem:[#allocation2 + $0x5e0] sm:$0xff] }
  0xba   :  { %2240 = vmatprep.mubr.f32.mxu1 %v192_v54 }
  0xbb   :  { %2097 = vmatmul.mubr.f32.gmra.mxu0 %v97_v19 }
  0xbc   :  { %2099 = vmatprep.mubr.f32.mxu0 %v98_v20 }
  0xbd   :  { %2241 = vmatmul.mubr.f32.gmra.mxu1 %v193_v55 }
  0xbe   :  { %2243 = vmatprep.mubr.f32.mxu1 %v194_v59  ;;  %v217_v59 = vld [vmem:[#allocation2 + $0x5f8] sm:$0xff] }
  0xbf   :  { %2100 = vmatmul.mubr.f32.gmra.mxu0 %v99_v23  ;;  %v205_v23 = vld [vmem:[#allocation2 + $0x598] sm:$0xff] }
  0xc0   :  { %2102 = vmatprep.mubr.f32.mxu0 %v100_v24 }
  0xc1   :  { %2244 = vmatmul.mubr.f32.gmra.mxu1 %v195_v62 }
  0xc2   :  { %2246 = vmatprep.mubr.f32.mxu1 %v196_v0 }
  0xc3   :  { %2103 = vmatmul.mubr.f32.gmra.mxu0 %v101_v25 }
  0xc4   :  { %2105 = vmatprep.mubr.f32.mxu0 %v102_v26 }
  0xc5   :  { %2247 = vmatmul.mubr.f32.gmra.mxu1 %v197_v1 }
  0xc6   :  { %2249 = vmatprep.mubr.f32.mxu1 %v198_v5 }
  0xc7   :  { %2106 = vmatmul.mubr.f32.gmra.mxu0 %v103_v29  ;;  %v207_v29 = vld [vmem:[#allocation2 + $0x5a8] sm:$0xff] }
  0xc8   :  { %2108 = vmatprep.mubr.f32.mxu0 %v104_v30 }
  0xc9   :  { %2250 = vmatmul.mubr.f32.gmra.mxu1 %v199_v8 }
  0xca   :  { %2252 = vmatprep.mubr.f32.mxu1 %v200_v10 }
  0xcb   :  { %2109 = vmatmul.mubr.f32.gmra.mxu0 %v105_v31 }
  0xcc   :  { %2111 = vmatprep.mubr.f32.mxu0 %v106_v32 }
  0xcd   :  { %2253 = vmatmul.mubr.f32.gmra.mxu1 %v201_v11 }
  0xce   :  { %2255 = vmatprep.mubr.f32.mxu1 %v202_v14 }
  0xcf   :  { %2112 = vmatmul.mubr.f32.gmra.mxu0 %v107_v33 }
  0xd0   :  { %2114 = vmatprep.mubr.f32.mxu0 %v108_v34  ;;  %v208_v34 = vld [vmem:[#allocation2 + $0x5b0] sm:$0xff] }
  0xd1   :  { %2256 = vmatmul.mubr.f32.gmra.mxu1 %v203_v15 }
  0xd2   :  { %2258 = vmatprep.mubr.f32.mxu1 %v204_v22 }
  0xd3   :  { %2115 = vmatmul.mubr.f32.gmra.mxu0 %v109_v35  ;;  %v209_v35 = vld [vmem:[#allocation2 + $0x5b8] sm:$0xff] }
  0xd4   :  { %2117 = vmatprep.mubr.f32.mxu0 %v110_v36 }
  0xd5   :  { %2259 = vmatmul.mubr.f32.gmra.mxu1 %v205_v23 }
  0xd6   :  { %2261 = vmatprep.mubr.f32.mxu1 %v206_v28 }
  0xd7   :  { %2118 = vmatmul.mubr.f32.gmra.mxu0 %v111_v37 }
  0xd8   :  { %2120 = vmatprep.mubr.f32.mxu0 %v112_v38 }
  0xd9   :  { %2262 = vmatmul.mubr.f32.gmra.mxu1 %v207_v29 }
  0xda   :  { %2264 = vmatprep.mubr.f32.mxu1 %v208_v34 }
  0xdb   :  { %2121 = vmatmul.mubr.f32.gmra.mxu0 %v113_v39 }
  0xdc   :  { %2123 = vmatprep.mubr.f32.mxu0 %v114_v40  ;;  %v210_v40 = vld [vmem:[#allocation2 + $0x5c0] sm:$0xff] }
  0xdd   :  { %2265 = vmatmul.mubr.f32.gmra.mxu1 %v209_v35 }
  0xde   :  { %2267 = vmatprep.mubr.f32.mxu1 %v210_v40 }
  0xdf   :  { %2124 = vmatmul.mubr.f32.gmra.mxu0 %v115_v42 }
  0xe0   :  { %2126 = vmatprep.mubr.f32.mxu0 %v116_v48 }
  0xe1   :  { %2268 = vmatmul.mubr.f32.gmra.mxu1 %v211_v41 }
  0xe3   :  { %2127 = vmatmul.mubr.f32.gmra.mxu0 %v117_v50 }
  0xe4   :  { %2129 = vmatprep.mubr.f32.mxu0 %v118_v58  ;;  %v216_v58 = vld [vmem:[#allocation2 + $0x5f0] sm:$0xff] }
  0xe7   :  { %2130 = vmatmul.mubr.f32.gmra.mxu0 %v119_v60 }
  0xe8   :  { %2132 = vmatprep.mubr.f32.mxu0 %v120_v4 }
  0xeb   :  { %2133 = vmatmul.mubr.f32.gmra.mxu0 %v121_v6 }
  0xef   :  { %v1993_v46 = vpop.f32.mrf.mxu0 }
  0xf1   :  { %v300_v47 = vpop.f32.mrf.mxu0  ;;  %v2137_v18 = vpop.f32.mrf.mxu1 }
  0xf2   :  { %1259 = vxpose.xlu0.b32.start [1/16] (narrow) %v300_v47, 8  ;;  %v213_v47 = vld [vmem:[#allocation2 + $0x5d8] sm:$0xff] }
  0xf3   :  { %v1996_v51 = vpop.f32.mrf.mxu0  ;;  %v780_v21 = vpop.f32.mrf.mxu1 }
  0xf5   :  { %v310_v53 = vpop.f32.mrf.mxu0  ;;  %v2140_v25 = vpop.f32.mrf.mxu1 }
  0xf6   :  { %1260 = vxpose.xlu0.b32.cont [2/16] (narrow) %v1993_v46, 8  ;;  %v212_v46 = vld [vmem:[#allocation2 + $0x5d0] sm:$0xff] }
  0xf7   :  { %v1999_v56 = vpop.f32.mrf.mxu0  ;;  %v790_v27 = vpop.f32.mrf.mxu1  ;;  %2270 = vmatprep.mubr.f32.mxu1 %v212_v46 }
  0xf8   :  { %2271 = vmatmul.mubr.f32.gmra.mxu1 %v213_v47 }
  0xf9   :  { %v320_v57 = vpop.f32.mrf.mxu0  ;;  %v2143_v31 = vpop.f32.mrf.mxu1  ;;  %2273 = vmatprep.mubr.f32.mxu1 %v214_v52 }
  0xfa   :  { %1261 = vxpose.xlu0.b32.cont [3/16] (narrow) %v310_v53, 8  ;;  %v215_v53 = vld [vmem:[#allocation2 + $0x5e8] sm:$0xff] }
  0xfb   :  { %v2002_v61 = vpop.f32.mrf.mxu0  ;;  %v800_v33 = vpop.f32.mrf.mxu1 }
  0xfc   :  { %2274 = vmatmul.mubr.f32.gmra.mxu1 %v215_v53 }
  0xfd   :  { %v330_v63 = vpop.f32.mrf.mxu0  ;;  %v2146_v37 = vpop.f32.mrf.mxu1  ;;  %2276 = vmatprep.mubr.f32.mxu1 %v216_v58 }
  0xfe   :  { %1262 = vxpose.xlu0.b32.cont [4/16] (narrow) %v1996_v51, 8 }
  0xff   :  { %v2005_v2 = vpop.f32.mrf.mxu0  ;;  %v810_v39 = vpop.f32.mrf.mxu1 }
 0x100   :  { %2277 = vmatmul.mubr.f32.gmra.mxu1 %v217_v59 }
 0x101   :  { %v340_v3 = vpop.f32.mrf.mxu0  ;;  %v2149_v43 = vpop.f32.mrf.mxu1 }
 0x102   :  { %1263 = vxpose.xlu0.b32.cont [5/16] (narrow) %v320_v57, 8 }
 0x103   :  { %v2008_v7 = vpop.f32.mrf.mxu0  ;;  %v820_v45 = vpop.f32.mrf.mxu1 }
 0x105   :  { %v350_v9 = vpop.f32.mrf.mxu0  ;;  %v2152_v49 = vpop.f32.mrf.mxu1 }
 0x106   :  { %1264 = vxpose.xlu0.b32.cont [6/16] (narrow) %v1999_v56, 8 }
 0x107   :  { %v2011_v12 = vpop.f32.mrf.mxu0  ;;  %v830_v51 = vpop.f32.mrf.mxu1 }
 0x109   :  { %v360_v13 = vpop.f32.mrf.mxu0  ;;  %v2155_v55 = vpop.f32.mrf.mxu1 }
 0x10a   :  { %1265 = vxpose.xlu0.b32.cont [7/16] (narrow) %v330_v63, 8 }
 0x10b   :  { %v2014_v16 = vpop.f32.mrf.mxu0  ;;  %v840_v57 = vpop.f32.mrf.mxu1 }
 0x10d   :  { %v370_v17 = vpop.f32.mrf.mxu0 }
 0x10e   :  { %1266 = vxpose.xlu0.b32.cont [8/16] (narrow) %v2002_v61, 8  ;;  %v2158_v61 = vpop.f32.mrf.mxu1 }
 0x10f   :  { %v2017_v19 = vpop.f32.mrf.mxu0 }
 0x110   :  { %v850_v63 = vpop.f32.mrf.mxu1 }
 0x111   :  { %v380_v20 = vpop.f32.mrf.mxu0 }
 0x112   :  { %1267 = vxpose.xlu0.b32.cont [9/16] (narrow) %v340_v3, 8  ;;  %1291 = vxpose.xlu1.b32.start [1/16] (narrow) %v380_v20, 8  ;;  %v2161_v0 = vpop.f32.mrf.mxu1 }
 0x113   :  { %v2020_v24 = vpop.f32.mrf.mxu0 }
 0x115   :  { %v390_v26 = vpop.f32.mrf.mxu0 }
 0x116   :  { %1268 = vxpose.xlu0.b32.cont [10/16] (narrow) %v2005_v2, 8  ;;  %1292 = vxpose.xlu1.b32.cont [2/16] (narrow) %v2017_v19, 8  ;;  %v860_v2 = vpop.f32.mrf.mxu1 }
 0x117   :  { %v2023_v30 = vpop.f32.mrf.mxu0 }
 0x118   :  { %v2164_v4 = vpop.f32.mrf.mxu1 }
 0x119   :  { %v400_v32 = vpop.f32.mrf.mxu0 }
 0x11a   :  { %1269 = vxpose.xlu0.b32.cont [11/16] (narrow) %v350_v9, 8  ;;  %1293 = vxpose.xlu1.b32.cont [3/16] (narrow) %v390_v26, 8  ;;  %v870_v6 = vpop.f32.mrf.mxu1 }
 0x11b   :  { %v2026_v36 = vpop.f32.mrf.mxu0 }
 0x11c   :  { %v2167_v8 = vpop.f32.mrf.mxu1 }
 0x11d   :  { %v410_v38 = vpop.f32.mrf.mxu0 }
 0x11e   :  { %1270 = vxpose.xlu0.b32.cont [12/16] (narrow) %v2008_v7, 8  ;;  %1294 = vxpose.xlu1.b32.cont [4/16] (narrow) %v2020_v24, 8  ;;  %v880_v10 = vpop.f32.mrf.mxu1 }
 0x11f   :  { %v2029_v42 = vpop.f32.mrf.mxu0 }
 0x121   :  { %v420_v44 = vpop.f32.mrf.mxu0 }
 0x122   :  { %1271 = vxpose.xlu0.b32.cont [13/16] (narrow) %v360_v13, 8  ;;  %1295 = vxpose.xlu1.b32.cont [5/16] (narrow) %v400_v32, 8 }
 0x123   :  { %v2032_v48 = vpop.f32.mrf.mxu0 }
 0x125   :  { %v430_v50 = vpop.f32.mrf.mxu0 }
 0x126   :  { %1272 = vxpose.xlu0.b32.cont [14/16] (narrow) %v2011_v12, 8  ;;  %1296 = vxpose.xlu1.b32.cont [6/16] (narrow) %v2023_v30, 8  ;;  %v2170_v12 = vpop.f32.mrf.mxu1 }
 0x127   :  { %v2035_v54 = vpop.f32.mrf.mxu0 }
 0x128   :  { %v890_v14 = vpop.f32.mrf.mxu1 }
 0x129   :  { %v440_v56 = vpop.f32.mrf.mxu0 }
 0x12a   :  { %1273 = vxpose.xlu0.b32.cont [15/16] (narrow) %v370_v17, 8  ;;  %1297 = vxpose.xlu1.b32.cont [7/16] (narrow) %v410_v38, 8 }
 0x12b   :  { %v2038_v60 = vpop.f32.mrf.mxu0 }
 0x12d   :  { %v450_v62 = vpop.f32.mrf.mxu0 }
 0x12e   :  { %1274 = vxpose.xlu0.b32.end [16/16] (narrow) %v2014_v16, 8  ;;  %1298 = vxpose.xlu1.b32.cont [8/16] (narrow) %v2026_v36, 8  ;;  %v2173_v16 = vpop.f32.mrf.mxu1 }
 0x12f   :  { %v2041_v1 = vpop.f32.mrf.mxu0 }
 0x131   :  { %v460_v3 = vpop.f32.mrf.mxu0 }
 0x132   :  { %1451 = vxpose.xlu0.b32.start [1/16] (narrow) %v780_v21, 8  ;;  %1299 = vxpose.xlu1.b32.cont [9/16] (narrow) %v420_v44, 8 }
 0x133   :  { %v2044_v5 = vpop.f32.mrf.mxu0 }
 0x135   :  { %v470_v7 = vpop.f32.mrf.mxu0 }
 0x136   :  { %1452 = vxpose.xlu0.b32.cont [2/16] (narrow) %v2137_v18, 8  ;;  %1300 = vxpose.xlu1.b32.cont [10/16] (narrow) %v2029_v42, 8  ;;  %v900_v18 = vpop.f32.mrf.mxu1 }
 0x137   :  { %v2047_v9 = vpop.f32.mrf.mxu0 }
 0x138   :  { %v2176_v20 = vpop.f32.mrf.mxu1 }
 0x139   :  { %v480_v11 = vpop.f32.mrf.mxu0 }
 0x13a   :  { %1453 = vxpose.xlu0.b32.cont [3/16] (narrow) %v790_v27, 8  ;;  %1301 = vxpose.xlu1.b32.cont [11/16] (narrow) %v430_v50, 8  ;;  %v910_v22 = vpop.f32.mrf.mxu1 }
 0x13b   :  { %v2050_v13 = vpop.f32.mrf.mxu0 }
 0x13c   :  { %v2179_v24 = vpop.f32.mrf.mxu1 }
 0x13d   :  { %v490_v15 = vpop.f32.mrf.mxu0 }
 0x13e   :  { %1454 = vxpose.xlu0.b32.cont [4/16] (narrow) %v2140_v25, 8  ;;  %1302 = vxpose.xlu1.b32.cont [12/16] (narrow) %v2032_v48, 8  ;;  %v920_v26 = vpop.f32.mrf.mxu1 }
 0x13f   :  { %v2053_v17 = vpop.f32.mrf.mxu0 }
 0x140   :  { %v2182_v28 = vpop.f32.mrf.mxu1 }
 0x141   :  { %v500_v19 = vpop.f32.mrf.mxu0 }
 0x142   :  { %1455 = vxpose.xlu0.b32.cont [5/16] (narrow) %v800_v33, 8  ;;  %1303 = vxpose.xlu1.b32.cont [13/16] (narrow) %v440_v56, 8  ;;  %v930_v30 = vpop.f32.mrf.mxu1 }
 0x143   :  { %v2056_v21 = vpop.f32.mrf.mxu0 }
 0x144   :  { %v2185_v33 = vpop.f32.mrf.mxu1 }
 0x145   :  { %v510_v23 = vpop.f32.mrf.mxu0 }
 0x146   :  { %1456 = vxpose.xlu0.b32.cont [6/16] (narrow) %v2143_v31, 8  ;;  %1304 = vxpose.xlu1.b32.cont [14/16] (narrow) %v2035_v54, 8  ;;  %v940_v35 = vpop.f32.mrf.mxu1 }
 0x147   :  { %v2059_v25 = vpop.f32.mrf.mxu0 }
 0x149   :  { %v520_v27 = vpop.f32.mrf.mxu0 }
 0x14a   :  { %1457 = vxpose.xlu0.b32.cont [7/16] (narrow) %v810_v39, 8  ;;  %1305 = vxpose.xlu1.b32.cont [15/16] (narrow) %v450_v62, 8 }
 0x14b   :  { %v2062_v29 = vpop.f32.mrf.mxu0 }
 0x14d   :  { %v530_v31 = vpop.f32.mrf.mxu0 }
 0x14e   :  { %1458 = vxpose.xlu0.b32.cont [8/16] (narrow) %v2146_v37, 8  ;;  %1306 = vxpose.xlu1.b32.end [16/16] (narrow) %v2038_v60, 8  ;;  %v2188_v37 = vpop.f32.mrf.mxu1 }
 0x14f   :  { %v2065_v32 = vpop.f32.mrf.mxu0 }
 0x150   :  { %v950_v39 = vpop.f32.mrf.mxu1 }
 0x151   :  { %v540_v34 = vpop.f32.mrf.mxu0 }
 0x152   :  { %1459 = vxpose.xlu0.b32.cont [9/16] (narrow) %v820_v45, 8  ;;  %1483 = vxpose.xlu1.b32.start [1/16] (narrow) %v860_v2, 8  ;;  %v2191_v41 = vpop.f32.mrf.mxu1 }
 0x153   :  { %v2068_v36 = vpop.f32.mrf.mxu0 }
 0x155   :  { %v550_v38 = vpop.f32.mrf.mxu0 }
 0x156   :  { %1460 = vxpose.xlu0.b32.cont [10/16] (narrow) %v2149_v43, 8  ;;  %1484 = vxpose.xlu1.b32.cont [2/16] (narrow) %v2161_v0, 8  ;;  %v960_v43 = vpop.f32.mrf.mxu1 }
 0x157   :  { %v2071_v40 = vpop.f32.mrf.mxu0 }
 0x158   :  { %v2194_v45 = vpop.f32.mrf.mxu1 }
 0x159   :  { %v560_v42 = vpop.f32.mrf.mxu0 }
 0x15a   :  { %1461 = vxpose.xlu0.b32.cont [11/16] (narrow) %v830_v51, 8  ;;  %1485 = vxpose.xlu1.b32.cont [3/16] (narrow) %v870_v6, 8  ;;  %v970_v47 = vpop.f32.mrf.mxu1 }
 0x15b   :  { %v2074_v44 = vpop.f32.mrf.mxu0 }
 0x15d   :  { %v570_v46 = vpop.f32.mrf.mxu0 }
 0x15e   :  { %1462 = vxpose.xlu0.b32.cont [12/16] (narrow) %v2152_v49, 8  ;;  %1486 = vxpose.xlu1.b32.cont [4/16] (narrow) %v2164_v4, 8  ;;  %v2197_v49 = vpop.f32.mrf.mxu1 }
 0x15f   :  { %v2077_v48 = vpop.f32.mrf.mxu0 }
 0x160   :  { %v980_v51 = vpop.f32.mrf.mxu1 }
 0x161   :  { %v580_v50 = vpop.f32.mrf.mxu0 }
 0x162   :  { %1463 = vxpose.xlu0.b32.cont [13/16] (narrow) %v840_v57, 8  ;;  %1487 = vxpose.xlu1.b32.cont [5/16] (narrow) %v880_v10, 8  ;;  %v2200_v53 = vpop.f32.mrf.mxu1 }
 0x163   :  { %v2080_v52 = vpop.f32.mrf.mxu0 }
 0x165   :  { %v590_v54 = vpop.f32.mrf.mxu0 }
 0x166   :  { %1464 = vxpose.xlu0.b32.cont [14/16] (narrow) %v2155_v55, 8  ;;  %1488 = vxpose.xlu1.b32.cont [6/16] (narrow) %v2167_v8, 8  ;;  %v990_v55 = vpop.f32.mrf.mxu1 }
 0x167   :  { %v2083_v56 = vpop.f32.mrf.mxu0 }
 0x168   :  { %v2203_v57 = vpop.f32.mrf.mxu1 }
 0x169   :  { %v600_v58 = vpop.f32.mrf.mxu0 }
 0x16a   :  { %1465 = vxpose.xlu0.b32.cont [15/16] (narrow) %v850_v63, 8  ;;  %1489 = vxpose.xlu1.b32.cont [7/16] (narrow) %v890_v14, 8  ;;  %v1000_v59 = vpop.f32.mrf.mxu1 }
 0x16b   :  { %v2086_v60 = vpop.f32.mrf.mxu0 }
 0x16d   :  { %v610_v62 = vpop.f32.mrf.mxu0 }
 0x16e   :  { %1466 = vxpose.xlu0.b32.end [16/16] (narrow) %v2158_v61, 8  ;;  %1490 = vxpose.xlu1.b32.cont [8/16] (narrow) %v2170_v12, 8  ;;  %v2206_v61 = vpop.f32.mrf.mxu1 }
 0x170   :  { %v1010_v63 = vpop.f32.mrf.mxu1 }
 0x172   :  { %1491 = vxpose.xlu1.b32.cont [9/16] (narrow) %v900_v18, 8  ;;  %1323 = vxpose.xlu0.b32.start [1/16] (narrow) %v460_v3, 8  ;;  %v2209_v0 = vpop.f32.mrf.mxu1 }
 0x174   :  { %v1020_v2 = vpop.f32.mrf.mxu1 }
 0x176   :  { %1492 = vxpose.xlu1.b32.cont [10/16] (narrow) %v2173_v16, 8  ;;  %1324 = vxpose.xlu0.b32.cont [2/16] (narrow) %v2041_v1, 8  ;;  %v2089_v1 = vpop.f32.mrf.mxu0  ;;  %v2212_v4 = vpop.f32.mrf.mxu1 }
 0x178   :  { %v620_v3 = vpop.f32.mrf.mxu0  ;;  %v1030_v6 = vpop.f32.mrf.mxu1 }
 0x17a   :  { %1493 = vxpose.xlu1.b32.cont [11/16] (narrow) %v910_v22, 8  ;;  %1325 = vxpose.xlu0.b32.cont [3/16] (narrow) %v470_v7, 8  ;;  %v2215_v8 = vpop.f32.mrf.mxu1 }
 0x17c   :  { %v1040_v10 = vpop.f32.mrf.mxu1 }
 0x17e   :  { %1494 = vxpose.xlu1.b32.cont [12/16] (narrow) %v2176_v20, 8  ;;  %1326 = vxpose.xlu0.b32.cont [4/16] (narrow) %v2044_v5, 8  ;;  %v2092_v5 = vpop.f32.mrf.mxu0  ;;  %v2218_v12 = vpop.f32.mrf.mxu1 }
 0x180   :  { %v630_v7 = vpop.f32.mrf.mxu0  ;;  %v1050_v14 = vpop.f32.mrf.mxu1 }
 0x182   :  { %1495 = vxpose.xlu1.b32.cont [13/16] (narrow) %v920_v26, 8  ;;  %1327 = vxpose.xlu0.b32.cont [5/16] (narrow) %v480_v11, 8  ;;  %v2221_v16 = vpop.f32.mrf.mxu1 }
 0x184   :  { %v1060_v18 = vpop.f32.mrf.mxu1 }
 0x186   :  { %1496 = vxpose.xlu1.b32.cont [14/16] (narrow) %v2179_v24, 8  ;;  %1328 = vxpose.xlu0.b32.cont [6/16] (narrow) %v2047_v9, 8  ;;  %v2095_v9 = vpop.f32.mrf.mxu0  ;;  %v2224_v20 = vpop.f32.mrf.mxu1 }
 0x188   :  { %v640_v11 = vpop.f32.mrf.mxu0  ;;  %v1070_v22 = vpop.f32.mrf.mxu1 }
 0x18a   :  { %1497 = vxpose.xlu1.b32.cont [15/16] (narrow) %v930_v30, 8  ;;  %1329 = vxpose.xlu0.b32.cont [7/16] (narrow) %v490_v15, 8  ;;  %v2227_v24 = vpop.f32.mrf.mxu1 }
 0x18c   :  { %v1080_v26 = vpop.f32.mrf.mxu1 }
 0x18e   :  { %1498 = vxpose.xlu1.b32.end [16/16] (narrow) %v2182_v28, 8  ;;  %1330 = vxpose.xlu0.b32.cont [8/16] (narrow) %v2050_v13, 8  ;;  %v2098_v13 = vpop.f32.mrf.mxu0  ;;  %v2230_v28 = vpop.f32.mrf.mxu1 }
 0x190   :  { %v650_v15 = vpop.f32.mrf.mxu0  ;;  %v1090_v30 = vpop.f32.mrf.mxu1 }
 0x192   :  { %1331 = vxpose.xlu0.b32.cont [9/16] (narrow) %v500_v19, 8  ;;  %1355 = vxpose.xlu1.b32.start [1/16] (narrow) %v540_v34, 8 }
 0x196   :  { %1332 = vxpose.xlu0.b32.cont [10/16] (narrow) %v2053_v17, 8  ;;  %1356 = vxpose.xlu1.b32.cont [2/16] (narrow) %v2065_v32, 8  ;;  %v2101_v17 = vpop.f32.mrf.mxu0 }
 0x198   :  { %v660_v19 = vpop.f32.mrf.mxu0 }
 0x19a   :  { %1333 = vxpose.xlu0.b32.cont [11/16] (narrow) %v510_v23, 8  ;;  %1357 = vxpose.xlu1.b32.cont [3/16] (narrow) %v550_v38, 8 }
 0x19e   :  { %1334 = vxpose.xlu0.b32.cont [12/16] (narrow) %v2056_v21, 8  ;;  %1358 = vxpose.xlu1.b32.cont [4/16] (narrow) %v2068_v36, 8  ;;  %v2104_v21 = vpop.f32.mrf.mxu0 }
 0x1a0   :  { %v670_v23 = vpop.f32.mrf.mxu0 }
 0x1a2   :  { %1335 = vxpose.xlu0.b32.cont [13/16] (narrow) %v520_v27, 8  ;;  %1359 = vxpose.xlu1.b32.cont [5/16] (narrow) %v560_v42, 8 }
 0x1a6   :  { %1336 = vxpose.xlu0.b32.cont [14/16] (narrow) %v2059_v25, 8  ;;  %1360 = vxpose.xlu1.b32.cont [6/16] (narrow) %v2071_v40, 8  ;;  %v2107_v25 = vpop.f32.mrf.mxu0 }
 0x1a8   :  { %v680_v27 = vpop.f32.mrf.mxu0 }
 0x1aa   :  { %1337 = vxpose.xlu0.b32.cont [15/16] (narrow) %v530_v31, 8  ;;  %1361 = vxpose.xlu1.b32.cont [7/16] (narrow) %v570_v46, 8 }
 0x1ae   :  { %1338 = vxpose.xlu0.b32.end [16/16] (narrow) %v2062_v29, 8  ;;  %1362 = vxpose.xlu1.b32.cont [8/16] (narrow) %v2074_v44, 8  ;;  %v2110_v29 = vpop.f32.mrf.mxu0 }
 0x1b0   :  { %v690_v31 = vpop.f32.mrf.mxu0 }
 0x1b2   :  { %1515 = vxpose.xlu0.b32.start [1/16] (narrow) %v940_v35, 8  ;;  %1363 = vxpose.xlu1.b32.cont [9/16] (narrow) %v580_v50, 8  ;;  %v2113_v32 = vpop.f32.mrf.mxu0 }
 0x1b4   :  { %v700_v34 = vpop.f32.mrf.mxu0 }
 0x1b6   :  { %1516 = vxpose.xlu0.b32.cont [2/16] (narrow) %v2185_v33, 8  ;;  %1364 = vxpose.xlu1.b32.cont [10/16] (narrow) %v2077_v48, 8  ;;  %v2233_v33 = vpop.f32.mrf.mxu1  ;;  %v2116_v36 = vpop.f32.mrf.mxu0 }
 0x1b8   :  { %v1100_v35 = vpop.f32.mrf.mxu1  ;;  %v710_v38 = vpop.f32.mrf.mxu0 }
 0x1ba   :  { %1517 = vxpose.xlu0.b32.cont [3/16] (narrow) %v950_v39, 8  ;;  %1365 = vxpose.xlu1.b32.cont [11/16] (narrow) %v590_v54, 8  ;;  %v2119_v40 = vpop.f32.mrf.mxu0 }
 0x1bc   :  { %v720_v42 = vpop.f32.mrf.mxu0 }
 0x1be   :  { %1518 = vxpose.xlu0.b32.cont [4/16] (narrow) %v2188_v37, 8  ;;  %1366 = vxpose.xlu1.b32.cont [12/16] (narrow) %v2080_v52, 8  ;;  %v2236_v37 = vpop.f32.mrf.mxu1  ;;  %v2122_v44 = vpop.f32.mrf.mxu0 }
 0x1c0   :  { %v1110_v39 = vpop.f32.mrf.mxu1  ;;  %v730_v46 = vpop.f32.mrf.mxu0 }
 0x1c2   :  { %1519 = vxpose.xlu0.b32.cont [5/16] (narrow) %v960_v43, 8  ;;  %1367 = vxpose.xlu1.b32.cont [13/16] (narrow) %v600_v58, 8  ;;  %v2125_v48 = vpop.f32.mrf.mxu0 }
 0x1c4   :  { %v740_v50 = vpop.f32.mrf.mxu0 }
 0x1c6   :  { %1520 = vxpose.xlu0.b32.cont [6/16] (narrow) %v2191_v41, 8  ;;  %1368 = vxpose.xlu1.b32.cont [14/16] (narrow) %v2083_v56, 8  ;;  %v2239_v41 = vpop.f32.mrf.mxu1  ;;  %v2128_v52 = vpop.f32.mrf.mxu0 }
 0x1c7   :  { %v2431_v56 = vpop.trf.xlu0 }
 0x1c8   :  { %v1120_v43 = vpop.f32.mrf.mxu1  ;;  %v750_v54 = vpop.f32.mrf.mxu0 }
 0x1ca   :  { %1521 = vxpose.xlu0.b32.cont [7/16] (narrow) %v970_v47, 8  ;;  %1369 = vxpose.xlu1.b32.cont [15/16] (narrow) %v610_v62, 8  ;;  %v2131_v58 = vpop.f32.mrf.mxu0 }
 0x1cb   :  { %v2435_v62 = vpop.trf.xlu0 }
 0x1ce   :  { %1522 = vxpose.xlu0.b32.cont [8/16] (narrow) %v2194_v45, 8  ;;  %1370 = vxpose.xlu1.b32.end [16/16] (narrow) %v2086_v60, 8  ;;  %v2242_v45 = vpop.f32.mrf.mxu1  ;;  %v760_v60 = vpop.f32.mrf.mxu0 }
 0x1d0   :  { %v1130_v47 = vpop.f32.mrf.mxu1 }
 0x1d2   :  { %1523 = vxpose.xlu0.b32.cont [9/16] (narrow) %v980_v51, 8  ;;  %1547 = vxpose.xlu1.b32.start [1/16] (narrow) %v1020_v2, 8 }
 0x1d6   :  { %1524 = vxpose.xlu0.b32.cont [10/16] (narrow) %v2197_v49, 8  ;;  %1548 = vxpose.xlu1.b32.cont [2/16] (narrow) %v2209_v0, 8  ;;  %v2245_v49 = vpop.f32.mrf.mxu1  ;;  %v2134_v0 = vpop.f32.mrf.mxu0 }
 0x1d8   :  { %v1140_v51 = vpop.f32.mrf.mxu1 }
 0x1da   :  { %1525 = vxpose.xlu0.b32.cont [11/16] (narrow) %v990_v55, 8  ;;  %1549 = vxpose.xlu1.b32.cont [3/16] (narrow) %v1030_v6, 8 }
 0x1de   :  { %1526 = vxpose.xlu0.b32.cont [12/16] (narrow) %v2200_v53, 8  ;;  %1550 = vxpose.xlu1.b32.cont [4/16] (narrow) %v2212_v4, 8  ;;  %v2248_v53 = vpop.f32.mrf.mxu1  ;;  %v770_v4 = vpop.f32.mrf.mxu0 }
 0x1e0   :  { %v1150_v55 = vpop.f32.mrf.mxu1 }
 0x1e2   :  { %1527 = vxpose.xlu0.b32.cont [13/16] (narrow) %v1000_v59, 8  ;;  %1551 = vxpose.xlu1.b32.cont [5/16] (narrow) %v1040_v10, 8  ;;  %v2251_v59 = vpop.f32.mrf.mxu1 }
 0x1e6   :  { %1528 = vxpose.xlu0.b32.cont [14/16] (narrow) %v2203_v57, 8  ;;  %1552 = vxpose.xlu1.b32.cont [6/16] (narrow) %v2215_v8, 8  ;;  %v2433_v57 = vpop.trf.xlu1 }
 0x1ea   :  { %1529 = vxpose.xlu0.b32.cont [15/16] (narrow) %v1010_v63, 8  ;;  %1553 = vxpose.xlu1.b32.cont [7/16] (narrow) %v1050_v14, 8  ;;  %v2437_v63 = vpop.trf.xlu1 }
 0x1ee   :  { %1530 = vxpose.xlu0.b32.end [16/16] (narrow) %v2206_v61, 8  ;;  %1554 = vxpose.xlu1.b32.cont [8/16] (narrow) %v2218_v12, 8  ;;  %v1160_v61 = vpop.f32.mrf.mxu1  ;;  %v1339_v2 = vpop.trf.xlu0 }
 0x1f2   :  { %1555 = vxpose.xlu1.b32.cont [9/16] (narrow) %v1060_v18, 8  ;;  %1387 = vxpose.xlu0.b32.start [1/16] (narrow) %v620_v3, 8 }
 0x1f6   :  { %1556 = vxpose.xlu1.b32.cont [10/16] (narrow) %v2221_v16, 8  ;;  %1388 = vxpose.xlu0.b32.cont [2/16] (narrow) %v2089_v1, 8  ;;  %v2254_v1 = vpop.f32.mrf.mxu1 }
 0x1fa   :  { %1557 = vxpose.xlu1.b32.cont [11/16] (narrow) %v1070_v22, 8  ;;  %1389 = vxpose.xlu0.b32.cont [3/16] (narrow) %v630_v7, 8  ;;  %v2363_v22 = vmov 1966171168  }
 0x1fe   :  { %1558 = vxpose.xlu1.b32.cont [12/16] (narrow) %v2224_v20, 8  ;;  %1390 = vxpose.xlu0.b32.cont [4/16] (narrow) %v2092_v5, 8  ;;  %v1170_v5 = vpop.f32.mrf.mxu1 }
 0x200   :  { %v2257_v6 = vpop.f32.mrf.mxu1 }
 0x202   :  { %1559 = vxpose.xlu1.b32.cont [13/16] (narrow) %v1080_v26, 8  ;;  %1391 = vxpose.xlu0.b32.cont [5/16] (narrow) %v640_v11, 8  ;;  %v1180_v10 = vpop.f32.mrf.mxu1 }
 0x204   :  { %v2260_v11 = vpop.f32.mrf.mxu1 }
 0x206   :  { %1560 = vxpose.xlu1.b32.cont [14/16] (narrow) %v2227_v24, 8  ;;  %1392 = vxpose.xlu0.b32.cont [6/16] (narrow) %v2095_v9, 8  ;;  %v1190_v12 = vpop.f32.mrf.mxu1  ;;  %v1662_v24 = vlaneseq }
 0x208   :  { %vm1733_vm0 = vcmp.lt.s32.totalorder %v1662_v24, 512 }
 0x20a   :  { %1561 = vxpose.xlu1.b32.cont [15/16] (narrow) %v1090_v30, 8  ;;  %1393 = vxpose.xlu0.b32.cont [7/16] (narrow) %v650_v15, 8  ;;  %v1655_v30 = vcombine.low %v2431_v56, %v2433_v57 }
 0x20e   :  { %1562 = vxpose.xlu1.b32.end [16/16] (narrow) %v2230_v28, 8  ;;  %1394 = vxpose.xlu0.b32.cont [8/16] (narrow) %v2098_v13, 8  ;;  %v1371_v3 = vpop.trf.xlu1  ;;  %v2263_v13 = vpop.f32.mrf.mxu1 }
 0x210   :  { %v1200_v14 = vpop.f32.mrf.mxu1 }
 0x212   :  { %1395 = vxpose.xlu0.b32.cont [9/16] (narrow) %v660_v19, 8  ;;  %1419 = vxpose.xlu1.b32.start [1/16] (narrow) %v700_v34, 8  ;;  %v2266_v15 = vpop.f32.mrf.mxu1  ;;  %v1658_v34 = vcombine.low %v2435_v62, %v2437_v63 }
 0x214   :  { %v1210_v16 = vpop.f32.mrf.mxu1 }
 0x216   :  { %1396 = vxpose.xlu0.b32.cont [10/16] (narrow) %v2101_v17, 8  ;;  %1420 = vxpose.xlu1.b32.cont [2/16] (narrow) %v2113_v32, 8  ;;  %v2269_v17 = vpop.f32.mrf.mxu1 }
 0x218   :  { %v1220_v18 = vpop.f32.mrf.mxu1 }
 0x21a   :  { %1397 = vxpose.xlu0.b32.cont [11/16] (narrow) %v670_v23, 8  ;;  %1421 = vxpose.xlu1.b32.cont [3/16] (narrow) %v710_v38, 8  ;;  %v2272_v19 = vpop.f32.mrf.mxu1  ;;  %v1660_v23 = vunpack.c.l.s4 %v2363_v22 }
 0x21c   :  { %v1230_v20 = vpop.f32.mrf.mxu1  ;;  %v1661_v26 = vunpack.c.0.s8 %v1660_v23 }
 0x21e   :  { %1398 = vxpose.xlu0.b32.cont [12/16] (narrow) %v2104_v21, 8  ;;  %1422 = vxpose.xlu1.b32.cont [4/16] (narrow) %v2116_v36, 8  ;;  %v2275_v21 = vpop.f32.mrf.mxu1 }
 0x222   :  { %1399 = vxpose.xlu0.b32.cont [13/16] (narrow) %v680_v27, 8  ;;  %1423 = vxpose.xlu1.b32.cont [5/16] (narrow) %v720_v42, 8  ;;  %v1663_v27 = vshrl.u32 %v1662_v24, 7 }
 0x226   :  { %1400 = vxpose.xlu0.b32.cont [14/16] (narrow) %v2107_v25, 8  ;;  %1424 = vxpose.xlu1.b32.cont [6/16] (narrow) %v2119_v40, 8  ;;  %v1240_v25 = vpop.f32.mrf.mxu1 }
 0x228   :  { %v2278_v28 = vpop.f32.mrf.mxu1 }
 0x22a   :  { %1401 = vxpose.xlu0.b32.cont [15/16] (narrow) %v690_v31, 8  ;;  %1425 = vxpose.xlu1.b32.cont [7/16] (narrow) %v730_v46, 8  ;;  %v1656_v31 = vcombine.low %v1339_v2, %v1371_v3  ;;  %v1250_v32 = vpop.f32.mrf.mxu1 }
 0x22e   :  { %1402 = vxpose.xlu0.b32.end [16/16] (narrow) %v2110_v29, 8  ;;  %1426 = vxpose.xlu1.b32.cont [8/16] (narrow) %v2122_v44, 8  ;;  %v2439_v7 = vpop.trf.xlu0  ;;  %v1664_v29 = vsub.s32 %v1661_v26, %v1663_v27 }
 0x230   :  { %v1686_v38 = vrot.slane %v1658_v34, %v1664_v29 }
 0x232   :  { %1579 = vxpose.xlu0.b32.start [1/16] (narrow) %v1100_v35, 8  ;;  %1427 = vxpose.xlu1.b32.cont [9/16] (narrow) %v740_v50, 8  ;;  %v1672_v35 = vrot.slane %v1656_v31, %v1664_v29 }
 0x236   :  { %1580 = vxpose.xlu0.b32.cont [2/16] (narrow) %v2233_v33, 8  ;;  %1428 = vxpose.xlu1.b32.cont [10/16] (narrow) %v2125_v48, 8  ;;  %v1665_v33 = vrot.slane %v1655_v30, %v1664_v29 }
 0x23a   :  { %1581 = vxpose.xlu0.b32.cont [3/16] (narrow) %v1110_v39, 8  ;;  %1429 = vxpose.xlu1.b32.cont [11/16] (narrow) %v750_v54, 8  ;;  %v1687_v39 = vcombine.low %v1665_v33, %v1672_v35 }
 0x23c   :  { %v1695_v42 = vrot.slane %v1687_v39, %v1664_v29 }
 0x23e   :  { %1582 = vxpose.xlu0.b32.cont [4/16] (narrow) %v2236_v37, 8  ;;  %1430 = vxpose.xlu1.b32.cont [12/16] (narrow) %v2128_v52, 8 }
 0x242   :  { %1583 = vxpose.xlu0.b32.cont [5/16] (narrow) %v1120_v43, 8  ;;  %1431 = vxpose.xlu1.b32.cont [13/16] (narrow) %v760_v60, 8 }
 0x246   :  { %1584 = vxpose.xlu0.b32.cont [6/16] (narrow) %v2239_v41, 8  ;;  %1432 = vxpose.xlu1.b32.cont [14/16] (narrow) %v2131_v58, 8 }
 0x24a   :  { %1585 = vxpose.xlu0.b32.cont [7/16] (narrow) %v1130_v47, 8  ;;  %1433 = vxpose.xlu1.b32.cont [15/16] (narrow) %v770_v4, 8 }
 0x24e   :  { %1586 = vxpose.xlu0.b32.cont [8/16] (narrow) %v2242_v45, 8  ;;  %1434 = vxpose.xlu1.b32.end [16/16] (narrow) %v2134_v0, 8  ;;  %v2441_v8 = vpop.trf.xlu1 }
 0x24f   :  { %v1704_v9 = vcombine.low %v2439_v7, %v2441_v8 }
 0x252   :  { %1587 = vxpose.xlu0.b32.cont [9/16] (narrow) %v1140_v51, 8  ;;  %1611 = vxpose.xlu1.b32.start [1/16] (narrow) %v1180_v10, 8 }
 0x256   :  { %1588 = vxpose.xlu0.b32.cont [10/16] (narrow) %v2245_v49, 8  ;;  %1612 = vxpose.xlu1.b32.cont [2/16] (narrow) %v2257_v6, 8  ;;  %v1712_v49 = vrot.slane %v1704_v9, %v1664_v29 }
 0x25a   :  { %1589 = vxpose.xlu0.b32.cont [11/16] (narrow) %v1150_v55, 8  ;;  %1613 = vxpose.xlu1.b32.cont [3/16] (narrow) %v1190_v12, 8 }
 0x25e   :  { %1590 = vxpose.xlu0.b32.cont [12/16] (narrow) %v2248_v53, 8  ;;  %1614 = vxpose.xlu1.b32.cont [4/16] (narrow) %v2260_v11, 8 }
 0x262   :  { %1591 = vxpose.xlu0.b32.cont [13/16] (narrow) %v1160_v61, 8  ;;  %1615 = vxpose.xlu1.b32.cont [5/16] (narrow) %v1200_v14, 8 }
 0x266   :  { %1592 = vxpose.xlu0.b32.cont [14/16] (narrow) %v2251_v59, 8  ;;  %1616 = vxpose.xlu1.b32.cont [6/16] (narrow) %v2263_v13, 8 }
 0x26a   :  { %1593 = vxpose.xlu0.b32.cont [15/16] (narrow) %v1170_v5, 8  ;;  %1617 = vxpose.xlu1.b32.cont [7/16] (narrow) %v1210_v16, 8 }
 0x26e   :  { %1594 = vxpose.xlu0.b32.end [16/16] (narrow) %v2254_v1, 8  ;;  %1618 = vxpose.xlu1.b32.cont [8/16] (narrow) %v2266_v15, 8  ;;  %v1403_v36 = vpop.trf.xlu0 }
 0x272   :  { %1619 = vxpose.xlu1.b32.cont [9/16] (narrow) %v1220_v18, 8 }
 0x276   :  { %1620 = vxpose.xlu1.b32.cont [10/16] (narrow) %v2269_v17, 8 }
 0x27a   :  { %1621 = vxpose.xlu1.b32.cont [11/16] (narrow) %v1230_v20, 8 }
 0x27e   :  { %1622 = vxpose.xlu1.b32.cont [12/16] (narrow) %v2272_v19, 8 }
 0x282   :  { %1623 = vxpose.xlu1.b32.cont [13/16] (narrow) %v1240_v25, 8 }
 0x286   :  { %1624 = vxpose.xlu1.b32.cont [14/16] (narrow) %v2275_v21, 8 }
 0x28a   :  { %1625 = vxpose.xlu1.b32.cont [15/16] (narrow) %v1250_v32, 8 }
 0x28e   :  { %1626 = vxpose.xlu1.b32.end [16/16] (narrow) %v2278_v28, 8  ;;  %v1435_v37 = vpop.trf.xlu1 }
 0x28f   :  { %v1657_v40 = vcombine.low %v1403_v36, %v1435_v37 }
 0x291   :  { %v1679_v41 = vrot.slane %v1657_v40, %v1664_v29 }
 0x293   :  { %v1688_v43 = vcombine.low %v1679_v41, %v1686_v38 }
 0x295   :  { %v1702_v44 = vrot.slane %v1688_v43, %v1664_v29 }
 0x297   :  { %v1703_v45 = vcombine.low %v1695_v42, %v1702_v44 }
 0x299   :  { %1730 = vst [vmem:[#allocation5] sm:$0xff] %v1703_v45 }
 0x2ae   :  { %v1595_v46 = vpop.trf.xlu0 }
 0x2ce   :  { %v1627_v47 = vpop.trf.xlu1 }
 0x2cf   :  { %v1705_v48 = vcombine.low %v1595_v46, %v1627_v47 }
 0x2d1   :  { %v1719_v50 = vrot.slane %v1705_v48, %v1664_v29 }
 0x2d3   :  { %v1720_v51 = vcombine.low %v1712_v49, %v1719_v50 }
 0x2d5   :  { %v1727_v52 = vrot.slane %v1720_v51, %v1664_v29 }
 0x2d7   :  { %1735 = vst.msk [vmem:[#allocation5 + $0x8] sm:$0xf] %vm1733_vm0, %v1727_v52 }
 0x2d8   :  { %2347 = shalt.err (!%p2344_p9)
}
 0x2d9   :  { %1745 = dma.vmem_to_hbm [thread:$0]  %s1743_s19, 192, %s2457_s2, [#allocation4]  }
 0x2da   :  { %2358 = dma.done.wait [#allocation4], 192  }
 0x2db   :  { %2359 = vsyncadd [#allocation4], 4294967104 }
 0x2dc   :  { %1749 = vsyncpa [#allocation3], 1 }
 0x2dd   :  { %1750 = vsyncpa [#allocation4], 1 }

</bundles_post_ra>
